<compile_context>
chip_gen: v7x
topology: tpu7x:2x2x1
jax: 0.10.0
libtpu: 0.0.40
codegen_flags: <defaults>
</compile_context>

<pallas_src>
import jax
import jax.numpy as jnp
import numpy as np
from jax.experimental import pallas as pl
from jax.experimental.pallas import tpu as pltpu


def _cbam_kernel(x_ref, w1_ref, b1_ref, w2t_ref, b2t_ref, band_ref, bconv_ref,
                 out_ref):
    """Fused CBAM forward for one (Bt, C, HW) batch tile.

    x_ref:     (Bt, C, HW)  VMEM  lane-dense activations
    w1_ref:    (C, Cr)      VMEM  Linear1 weight (h = pooled @ w1 + b1)
    b1_ref:    (1, Cr)      VMEM
    w2t_ref:   (C, Cr)      VMEM  Linear2 weight, pre-transposed
    b2t_ref:   (C, 1)       VMEM
    band_ref:  (2*HW, HW)   VMEM  banded conv matrix (weights + border validity baked in)
    bconv_ref: (1,)         SMEM  conv bias
    out_ref:   (Bt, C, HW)  VMEM
    """
    f32 = jnp.float32
    Bt = x_ref.shape[0]

    # Hoist the tiny channel-MLP params out of the per-batch loop.
    w1 = w1_ref[...].astype(f32)       # (C, Cr)
    b1 = b1_ref[...].astype(f32)       # (1, Cr)
    w2t = w2t_ref[...].astype(f32)     # (C, Cr)
    b2t = b2t_ref[...].astype(f32)     # (C, 1)

    # ---- Channel attention per batch element (VPU multiply-reduce; MLP is tiny) ----
    ca_all, max_rows, avg_rows = [], [], []
    for b in range(Bt):                               # static unroll, Bt kept small
        xb = x_ref[b].astype(f32)                                         # (C, HW)
        pooled = jnp.mean(xb, axis=1, keepdims=True)                      # (C, 1)
        h = jnp.sum(pooled * w1, axis=0, keepdims=True)                   # (1, Cr)
        h = jnp.maximum(h + b1, 0.0)                                      # ReLU
        logits = jnp.sum(h * w2t, axis=1, keepdims=True)                  # (C, 1)
        logits = 2.0 * (logits + b2t)            # max + avg branches are identical
        logits = logits - jnp.max(logits, axis=0, keepdims=True)
        e = jnp.exp(logits)
        ca = e / jnp.sum(e, axis=0, keepdims=True)   # exact softmax (tiny divide)
        ca_all.append(ca)

        yb = xb * ca                                                      # (C, HW)
        max_rows.append(jnp.max(yb, axis=0, keepdims=True))               # (1, HW)
        avg_rows.append(jnp.mean(yb, axis=0, keepdims=True))              # (1, HW)

    # ---- Spatial attention: one MXU matmul for the whole batch tile ----------------
    # stacked[:, :HW] = channel-max planes, stacked[:, HW:] = channel-avg planes; the
    # banded matrix contracts both against the baked-in K*K conv weights at once.
    stacked = jnp.concatenate(
        [jnp.concatenate(max_rows, axis=0), jnp.concatenate(avg_rows, axis=0)],
        axis=1)                                                           # (Bt, 2*HW)
    conv = jnp.dot(stacked, band_ref[...],
                   preferred_element_type=f32) + bconv_ref[0]             # (Bt, HW)
    sa = 1.0 / (1.0 + jnp.exp(-conv))                                     # sigmoid

    # ---- Residual combine (x re-read from VMEM; cheaper than keeping y live) -------
    for b in range(Bt):
        xb = x_ref[b].astype(f32)                                         # (C, HW)
        yb = xb * ca_all[b]
        out_ref[b] = (xb + yb * sa[b:b + 1, :]).astype(out_ref.dtype)


def _build_band_matrix(conv_w, H, W):
    """(2*HW, HW) matrix s.t. [max_plane | avg_plane] @ band == the zero-padded conv.

    band[p, q]      += conv_w[0, kh, kw]   (max plane)
    band[HW + p, q] += conv_w[1, kh, kw]   (avg plane)
    whenever input pixel p reaches output pixel q through tap (kh, kw); out-of-image
    taps are simply absent, reproducing nn.Conv2d(padding=K//2)'s zero padding.
    """
    w = np.asarray(conv_w, np.float32)                # (2, K, K): ch0 = max, ch1 = avg
    K = w.shape[-1]
    p = K // 2
    HW = H * W
    band = np.zeros((2 * HW, HW), np.float32)
    oh, ow = np.divmod(np.arange(HW), W)              # output row / col per flat index
    for kh in range(K):
        ih = oh + kh - p
        for kw in range(K):
            iw = ow + kw - p
            q = np.nonzero((ih >= 0) & (ih < H) & (iw >= 0) & (iw < W))[0]
            pix = ih[q] * W + iw[q]
            band[pix, q] += w[0, kh, kw]
            band[HW + pix, q] += w[1, kh, kw]
    return jnp.asarray(band)


def _pick_batch_tile(B, C, HW, itemsize, target_block_bytes=2 << 20, max_unroll=16):
    """Largest divisor of B giving ~target-sized x blocks, keeping the grid >= 2 long."""
    max_bt = int(max(1, min(target_block_bytes // (C * HW * itemsize), max_unroll)))
    if B >= 2:
        max_bt = min(max_bt, (B + 1) // 2)   # >= 2 grid steps -> megacore split on v7x
    bt = 1
    for d in range(1, B + 1):
        if B % d == 0 and d <= max_bt:
            bt = d
    return bt


def cbam_block(x, w1, b1, w2, b2, conv_w, conv_b):
    """CBAMBlock forward.  x: (B, C, H, W); conv_w: (2, K, K); conv_b: (1,)."""
    B, C, H, W = x.shape
    HW = H * W
    Cr = w1.shape[1]

    # Layout plumbing (no compute): lane-dense activations, pre-transposed params, and
    # the banded conv matrix.  The band is O(HW^2) bytes -- fine for the small spatial
    # maps CBAM attention operates on (0.5 MiB at 16x16).
    x_flat = x.reshape(B, C, HW)
    w1f = w1.astype(jnp.float32)                              # (C, Cr)
    b1f = jnp.reshape(b1, (1, Cr)).astype(jnp.float32)
    w2t = jnp.transpose(w2).astype(jnp.float32)               # (C, Cr)
    b2t = jnp.reshape(b2, (C, 1)).astype(jnp.float32)
    band = _build_band_matrix(conv_w, H, W)                   # (2*HW, HW) f32
    bconv = conv_b.astype(jnp.float32)

    itemsize = x.dtype.itemsize
    Bt = _pick_batch_tile(B, C, HW, itemsize)
    grid = (B // Bt,)

    # VMEM sized to need: double-buffered in+out x blocks + params (band dominates).
    block_bytes = Bt * C * HW * itemsize
    param_bytes = 4 * (band.size + w1f.size + b1f.size + w2t.size + b2t.size)
    vmem_limit = int(min(max(4 * block_bytes + 2 * param_bytes + (2 << 20), 8 << 20),
                         48 << 20))

    out_flat = pl.pallas_call(
        _cbam_kernel,
        out_shape=jax.ShapeDtypeStruct((B, C, HW), x.dtype),
        grid=grid,
        in_specs=[
            pl.BlockSpec((Bt, C, HW), lambda b: (b, 0, 0)),         # x batch tile
            pl.BlockSpec((C, Cr), lambda b: (0, 0)),                # w1
            pl.BlockSpec((1, Cr), lambda b: (0, 0)),                # b1
            pl.BlockSpec((C, Cr), lambda b: (0, 0)),                # w2^T
            pl.BlockSpec((C, 1), lambda b: (0, 0)),                 # b2^T
            pl.BlockSpec((2 * HW, HW), lambda b: (0, 0)),           # banded conv matrix
            pl.BlockSpec(memory_space=pltpu.MemorySpace.SMEM),      # conv bias scalar
        ],
        out_specs=pl.BlockSpec((Bt, C, HW), lambda b: (b, 0, 0)),
        compiler_params=pltpu.CompilerParams(
            dimension_semantics=("parallel",),   # batch tiles are independent
            vmem_limit_bytes=vmem_limit),
    )(x_flat, w1f, b1f, w2t, b2t, band, bconv)

    return out_flat.reshape(B, C, H, W)


def cbam_reference(x, w1, b1, w2, b2, conv_w, conv_b):
    """Pure-JAX reference implementing the same semantics."""
    K = conv_w.shape[1]
    p = K // 2
    xf = x.astype(jnp.float32)
    pooled = jnp.mean(xf, axis=(2, 3))
    h = jnp.maximum(pooled @ w1 + b1, 0.0)
    logits = 2.0 * (h @ w2 + b2)
    ca = jax.nn.softmax(logits, axis=-1)
    y = xf * ca[:, :, None, None]
    max_c = jnp.max(y, axis=1, keepdims=True)
    avg_c = jnp.mean(y, axis=1, keepdims=True)
    feat = jnp.concatenate([max_c, avg_c], axis=1)                       # (B, 2, H, W)
    conv = jax.lax.conv_general_dilated(
        feat, conv_w.reshape(1, 2, K, K),
        window_strides=(1, 1), padding=[(p, p), (p, p)],
        dimension_numbers=("NCHW", "OIHW", "NCHW"),
        precision=jax.lax.Precision.HIGHEST)
    sa = jax.nn.sigmoid(conv + conv_b[0])                                # (B, 1, H, W)
    return xf + y * sa


if __name__ == "__main__":
    B, C, H, W = 8, 32, 16, 16       # B=8 so the batch-tiled grid has >= 2 steps
    reduction = 16
    Cr = C // reduction
    K = 7  # classic CBAM spatial kernel (module default 49 noted in TODO above)

    key = jax.random.PRNGKey(0)
    kx, k1, k2, k3, k4, k5, k6 = jax.random.split(key, 7)
    x = jax.random.normal(kx, (B, C, H, W), jnp.float32)
    w1 = jax.random.normal(k1, (C, Cr), jnp.float32) * 0.1
    b1 = jax.random.normal(k2, (1, Cr), jnp.float32) * 0.1
    w2 = jax.random.normal(k3, (Cr, C), jnp.float32) * 0.1
    b2 = jax.random.normal(k4, (1, C), jnp.float32) * 0.1
    conv_w = jax.random.normal(k5, (2, K, K), jnp.float32) * 0.05
    conv_b = jax.random.normal(k6, (1,), jnp.float32) * 0.05

    out = jax.block_until_ready(cbam_block(x, w1, b1, w2, b2, conv_w, conv_b))
    ref = jax.block_until_ready(cbam_reference(x, w1, b1, w2, b2, conv_w, conv_b))

    np.testing.assert_allclose(np.asarray(out), np.asarray(ref), rtol=1e-3, atol=1e-3)

    print("KERNEL_OK")
</pallas_src>

<mosaic_0001>
module attributes {stable_mosaic.version = 11 : i64} {
  func.func @_cbam_kernel(%arg0: i32, %arg1: memref<4x32x256xf32, #tpu.memory_space<vmem>>, %arg2: memref<32x2xf32, #tpu.memory_space<vmem>>, %arg3: memref<1x2xf32, #tpu.memory_space<vmem>>, %arg4: memref<32x2xf32, #tpu.memory_space<vmem>>, %arg5: memref<32x1xf32, #tpu.memory_space<vmem>>, %arg6: memref<512x256xf32, #tpu.memory_space<vmem>>, %arg7: memref<1xf32, #tpu.memory_space<smem>>, %arg8: memref<4x32x256xf32, #tpu.memory_space<vmem>>) attributes {dimension_semantics = [#tpu.dimension_semantics<parallel>], iteration_bounds = array<i64: 2>, scalar_prefetch = 0 : i64, scratch_operands = 0 : i64, tpu.core_type = #tpu.core_type<tc>, window_params = [{transform_indices = @transform_0, window_bounds = array<i64: 4, 32, 256>}, {pipeline_mode = #tpu.pipeline_mode<synchronous>, transform_indices = @transform_1, window_bounds = array<i64: 32, 2>}, {pipeline_mode = #tpu.pipeline_mode<synchronous>, transform_indices = @transform_2, window_bounds = array<i64: 1, 2>}, {pipeline_mode = #tpu.pipeline_mode<synchronous>, transform_indices = @transform_3, window_bounds = array<i64: 32, 2>}, {pipeline_mode = #tpu.pipeline_mode<synchronous>, transform_indices = @transform_4, window_bounds = array<i64: 32, 1>}, {pipeline_mode = #tpu.pipeline_mode<synchronous>, transform_indices = @transform_5, window_bounds = array<i64: 512, 256>}, {transform_indices = @transform_6, window_bounds = array<i64: 1>}, {transform_indices = @transform_7, window_bounds = array<i64: 4, 32, 256>}]} {
    %c0 = arith.constant 0 : index
    %c0_0 = arith.constant 0 : index
    %0 = vector.load %arg2[%c0, %c0_0] : memref<32x2xf32, #tpu.memory_space<vmem>>, vector<32x2xf32>
    %c0_1 = arith.constant 0 : index
    %c0_2 = arith.constant 0 : index
    %1 = vector.load %arg3[%c0_1, %c0_2] : memref<1x2xf32, #tpu.memory_space<vmem>>, vector<1x2xf32>
    %c0_3 = arith.constant 0 : index
    %c0_4 = arith.constant 0 : index
    %2 = vector.load %arg4[%c0_3, %c0_4] : memref<32x2xf32, #tpu.memory_space<vmem>>, vector<32x2xf32>
    %c0_5 = arith.constant 0 : index
    %c0_6 = arith.constant 0 : index
    %3 = vector.load %arg5[%c0_5, %c0_6] : memref<32x1xf32, #tpu.memory_space<vmem>>, vector<32x1xf32>
    %c0_7 = arith.constant 0 : index
    %c0_8 = arith.constant 0 : index
    %c0_9 = arith.constant 0 : index
    %4 = vector.load %arg1[%c0_7, %c0_8, %c0_9] : memref<4x32x256xf32, #tpu.memory_space<vmem>>, vector<1x32x256xf32>
    %5 = vector.shape_cast %4 : vector<1x32x256xf32> to vector<32x256xf32>
    %cst = arith.constant dense<0.000000e+00> : vector<32xf32>
    %6 = vector.multi_reduction <add>, %5, %cst [1] : vector<32x256xf32> to vector<32xf32>
    %7 = vector.shape_cast %6 : vector<32xf32> to vector<32x1xf32>
    %cst_10 = arith.constant 2.560000e+02 : f32
    %8 = vector.broadcast %cst_10 : f32 to vector<32x1xf32>
    %9 = arith.divf %7, %8 : vector<32x1xf32>
    %10 = vector.broadcast %9 : vector<32x1xf32> to vector<32x2xf32>
    %11 = arith.mulf %10, %0 : vector<32x2xf32>
    %cst_11 = arith.constant dense<0.000000e+00> : vector<2xf32>
    %12 = vector.multi_reduction <add>, %11, %cst_11 [0] : vector<32x2xf32> to vector<2xf32>
    %13 = vector.shape_cast %12 : vector<2xf32> to vector<1x2xf32>
    %14 = arith.addf %13, %1 : vector<1x2xf32>
    %cst_12 = arith.constant 0.000000e+00 : f32
    %15 = vector.broadcast %cst_12 : f32 to vector<1x2xf32>
    %16 = arith.maximumf %14, %15 : vector<1x2xf32>
    %17 = vector.broadcast %16 : vector<1x2xf32> to vector<32x2xf32>
    %18 = arith.mulf %17, %2 : vector<32x2xf32>
    %cst_13 = arith.constant dense<0.000000e+00> : vector<32xf32>
    %19 = vector.multi_reduction <add>, %18, %cst_13 [1] : vector<32x2xf32> to vector<32xf32>
    %20 = vector.shape_cast %19 : vector<32xf32> to vector<32x1xf32>
    %21 = arith.addf %20, %3 : vector<32x1xf32>
    %cst_14 = arith.constant 2.000000e+00 : f32
    %22 = vector.broadcast %cst_14 : f32 to vector<32x1xf32>
    %23 = arith.mulf %22, %21 : vector<32x1xf32>
    %cst_15 = arith.constant dense<0xFF800000> : vector<1xf32>
    %24 = vector.multi_reduction <maximumf>, %23, %cst_15 [0] : vector<32x1xf32> to vector<1xf32>
    %25 = vector.shape_cast %24 : vector<1xf32> to vector<1x1xf32>
    %26 = vector.broadcast %25 : vector<1x1xf32> to vector<32x1xf32>
    %27 = arith.subf %23, %26 : vector<32x1xf32>
    %28 = math.exp %27 : vector<32x1xf32>
    %cst_16 = arith.constant dense<0.000000e+00> : vector<1xf32>
    %29 = vector.multi_reduction <add>, %28, %cst_16 [0] : vector<32x1xf32> to vector<1xf32>
    %30 = vector.shape_cast %29 : vector<1xf32> to vector<1x1xf32>
    %31 = vector.broadcast %30 : vector<1x1xf32> to vector<32x1xf32>
    %32 = arith.divf %28, %31 : vector<32x1xf32>
    %33 = vector.broadcast %32 : vector<32x1xf32> to vector<32x256xf32>
    %34 = arith.mulf %5, %33 : vector<32x256xf32>
    %cst_17 = arith.constant dense<0xFF800000> : vector<256xf32>
    %35 = vector.multi_reduction <maximumf>, %34, %cst_17 [0] : vector<32x256xf32> to vector<256xf32>
    %36 = vector.shape_cast %35 : vector<256xf32> to vector<1x256xf32>
    %cst_18 = arith.constant dense<0.000000e+00> : vector<256xf32>
    %37 = vector.multi_reduction <add>, %34, %cst_18 [0] : vector<32x256xf32> to vector<256xf32>
    %38 = vector.shape_cast %37 : vector<256xf32> to vector<1x256xf32>
    %cst_19 = arith.constant 3.200000e+01 : f32
    %39 = vector.broadcast %cst_19 : f32 to vector<1x256xf32>
    %40 = arith.divf %38, %39 : vector<1x256xf32>
    %c1 = arith.constant 1 : index
    %c0_20 = arith.constant 0 : index
    %c0_21 = arith.constant 0 : index
    %41 = vector.load %arg1[%c1, %c0_20, %c0_21] : memref<4x32x256xf32, #tpu.memory_space<vmem>>, vector<1x32x256xf32>
    %42 = vector.shape_cast %41 : vector<1x32x256xf32> to vector<32x256xf32>
    %cst_22 = arith.constant dense<0.000000e+00> : vector<32xf32>
    %43 = vector.multi_reduction <add>, %42, %cst_22 [1] : vector<32x256xf32> to vector<32xf32>
    %44 = vector.shape_cast %43 : vector<32xf32> to vector<32x1xf32>
    %cst_23 = arith.constant 2.560000e+02 : f32
    %45 = vector.broadcast %cst_23 : f32 to vector<32x1xf32>
    %46 = arith.divf %44, %45 : vector<32x1xf32>
    %47 = vector.broadcast %46 : vector<32x1xf32> to vector<32x2xf32>
    %48 = arith.mulf %47, %0 : vector<32x2xf32>
    %cst_24 = arith.constant dense<0.000000e+00> : vector<2xf32>
    %49 = vector.multi_reduction <add>, %48, %cst_24 [0] : vector<32x2xf32> to vector<2xf32>
    %50 = vector.shape_cast %49 : vector<2xf32> to vector<1x2xf32>
    %51 = arith.addf %50, %1 : vector<1x2xf32>
    %cst_25 = arith.constant 0.000000e+00 : f32
    %52 = vector.broadcast %cst_25 : f32 to vector<1x2xf32>
    %53 = arith.maximumf %51, %52 : vector<1x2xf32>
    %54 = vector.broadcast %53 : vector<1x2xf32> to vector<32x2xf32>
    %55 = arith.mulf %54, %2 : vector<32x2xf32>
    %cst_26 = arith.constant dense<0.000000e+00> : vector<32xf32>
    %56 = vector.multi_reduction <add>, %55, %cst_26 [1] : vector<32x2xf32> to vector<32xf32>
    %57 = vector.shape_cast %56 : vector<32xf32> to vector<32x1xf32>
    %58 = arith.addf %57, %3 : vector<32x1xf32>
    %cst_27 = arith.constant 2.000000e+00 : f32
    %59 = vector.broadcast %cst_27 : f32 to vector<32x1xf32>
    %60 = arith.mulf %59, %58 : vector<32x1xf32>
    %cst_28 = arith.constant dense<0xFF800000> : vector<1xf32>
    %61 = vector.multi_reduction <maximumf>, %60, %cst_28 [0] : vector<32x1xf32> to vector<1xf32>
    %62 = vector.shape_cast %61 : vector<1xf32> to vector<1x1xf32>
    %63 = vector.broadcast %62 : vector<1x1xf32> to vector<32x1xf32>
    %64 = arith.subf %60, %63 : vector<32x1xf32>
    %65 = math.exp %64 : vector<32x1xf32>
    %cst_29 = arith.constant dense<0.000000e+00> : vector<1xf32>
    %66 = vector.multi_reduction <add>, %65, %cst_29 [0] : vector<32x1xf32> to vector<1xf32>
    %67 = vector.shape_cast %66 : vector<1xf32> to vector<1x1xf32>
    %68 = vector.broadcast %67 : vector<1x1xf32> to vector<32x1xf32>
    %69 = arith.divf %65, %68 : vector<32x1xf32>
    %70 = vector.broadcast %69 : vector<32x1xf32> to vector<32x256xf32>
    %71 = arith.mulf %42, %70 : vector<32x256xf32>
    %cst_30 = arith.constant dense<0xFF800000> : vector<256xf32>
    %72 = vector.multi_reduction <maximumf>, %71, %cst_30 [0] : vector<32x256xf32> to vector<256xf32>
    %73 = vector.shape_cast %72 : vector<256xf32> to vector<1x256xf32>
    %cst_31 = arith.constant dense<0.000000e+00> : vector<256xf32>
    %74 = vector.multi_reduction <add>, %71, %cst_31 [0] : vector<32x256xf32> to vector<256xf32>
    %75 = vector.shape_cast %74 : vector<256xf32> to vector<1x256xf32>
    %cst_32 = arith.constant 3.200000e+01 : f32
    %76 = vector.broadcast %cst_32 : f32 to vector<1x256xf32>
    %77 = arith.divf %75, %76 : vector<1x256xf32>
    %c2 = arith.constant 2 : index
    %c0_33 = arith.constant 0 : index
    %c0_34 = arith.constant 0 : index
    %78 = vector.load %arg1[%c2, %c0_33, %c0_34] : memref<4x32x256xf32, #tpu.memory_space<vmem>>, vector<1x32x256xf32>
    %79 = vector.shape_cast %78 : vector<1x32x256xf32> to vector<32x256xf32>
    %cst_35 = arith.constant dense<0.000000e+00> : vector<32xf32>
    %80 = vector.multi_reduction <add>, %79, %cst_35 [1] : vector<32x256xf32> to vector<32xf32>
    %81 = vector.shape_cast %80 : vector<32xf32> to vector<32x1xf32>
    %cst_36 = arith.constant 2.560000e+02 : f32
    %82 = vector.broadcast %cst_36 : f32 to vector<32x1xf32>
    %83 = arith.divf %81, %82 : vector<32x1xf32>
    %84 = vector.broadcast %83 : vector<32x1xf32> to vector<32x2xf32>
    %85 = arith.mulf %84, %0 : vector<32x2xf32>
    %cst_37 = arith.constant dense<0.000000e+00> : vector<2xf32>
    %86 = vector.multi_reduction <add>, %85, %cst_37 [0] : vector<32x2xf32> to vector<2xf32>
    %87 = vector.shape_cast %86 : vector<2xf32> to vector<1x2xf32>
    %88 = arith.addf %87, %1 : vector<1x2xf32>
    %cst_38 = arith.constant 0.000000e+00 : f32
    %89 = vector.broadcast %cst_38 : f32 to vector<1x2xf32>
    %90 = arith.maximumf %88, %89 : vector<1x2xf32>
    %91 = vector.broadcast %90 : vector<1x2xf32> to vector<32x2xf32>
    %92 = arith.mulf %91, %2 : vector<32x2xf32>
    %cst_39 = arith.constant dense<0.000000e+00> : vector<32xf32>
    %93 = vector.multi_reduction <add>, %92, %cst_39 [1] : vector<32x2xf32> to vector<32xf32>
    %94 = vector.shape_cast %93 : vector<32xf32> to vector<32x1xf32>
    %95 = arith.addf %94, %3 : vector<32x1xf32>
    %cst_40 = arith.constant 2.000000e+00 : f32
    %96 = vector.broadcast %cst_40 : f32 to vector<32x1xf32>
    %97 = arith.mulf %96, %95 : vector<32x1xf32>
    %cst_41 = arith.constant dense<0xFF800000> : vector<1xf32>
    %98 = vector.multi_reduction <maximumf>, %97, %cst_41 [0] : vector<32x1xf32> to vector<1xf32>
    %99 = vector.shape_cast %98 : vector<1xf32> to vector<1x1xf32>
    %100 = vector.broadcast %99 : vector<1x1xf32> to vector<32x1xf32>
    %101 = arith.subf %97, %100 : vector<32x1xf32>
    %102 = math.exp %101 : vector<32x1xf32>
    %cst_42 = arith.constant dense<0.000000e+00> : vector<1xf32>
    %103 = vector.multi_reduction <add>, %102, %cst_42 [0] : vector<32x1xf32> to vector<1xf32>
    %104 = vector.shape_cast %103 : vector<1xf32> to vector<1x1xf32>
    %105 = vector.broadcast %104 : vector<1x1xf32> to vector<32x1xf32>
    %106 = arith.divf %102, %105 : vector<32x1xf32>
    %107 = vector.broadcast %106 : vector<32x1xf32> to vector<32x256xf32>
    %108 = arith.mulf %79, %107 : vector<32x256xf32>
    %cst_43 = arith.constant dense<0xFF800000> : vector<256xf32>
    %109 = vector.multi_reduction <maximumf>, %108, %cst_43 [0] : vector<32x256xf32> to vector<256xf32>
    %110 = vector.shape_cast %109 : vector<256xf32> to vector<1x256xf32>
    %cst_44 = arith.constant dense<0.000000e+00> : vector<256xf32>
    %111 = vector.multi_reduction <add>, %108, %cst_44 [0] : vector<32x256xf32> to vector<256xf32>
    %112 = vector.shape_cast %111 : vector<256xf32> to vector<1x256xf32>
    %cst_45 = arith.constant 3.200000e+01 : f32
    %113 = vector.broadcast %cst_45 : f32 to vector<1x256xf32>
    %114 = arith.divf %112, %113 : vector<1x256xf32>
    %c3 = arith.constant 3 : index
    %c0_46 = arith.constant 0 : index
    %c0_47 = arith.constant 0 : index
    %115 = vector.load %arg1[%c3, %c0_46, %c0_47] : memref<4x32x256xf32, #tpu.memory_space<vmem>>, vector<1x32x256xf32>
    %116 = vector.shape_cast %115 : vector<1x32x256xf32> to vector<32x256xf32>
    %cst_48 = arith.constant dense<0.000000e+00> : vector<32xf32>
    %117 = vector.multi_reduction <add>, %116, %cst_48 [1] : vector<32x256xf32> to vector<32xf32>
    %118 = vector.shape_cast %117 : vector<32xf32> to vector<32x1xf32>
    %cst_49 = arith.constant 2.560000e+02 : f32
    %119 = vector.broadcast %cst_49 : f32 to vector<32x1xf32>
    %120 = arith.divf %118, %119 : vector<32x1xf32>
    %121 = vector.broadcast %120 : vector<32x1xf32> to vector<32x2xf32>
    %122 = arith.mulf %121, %0 : vector<32x2xf32>
    %cst_50 = arith.constant dense<0.000000e+00> : vector<2xf32>
    %123 = vector.multi_reduction <add>, %122, %cst_50 [0] : vector<32x2xf32> to vector<2xf32>
    %124 = vector.shape_cast %123 : vector<2xf32> to vector<1x2xf32>
    %125 = arith.addf %124, %1 : vector<1x2xf32>
    %cst_51 = arith.constant 0.000000e+00 : f32
    %126 = vector.broadcast %cst_51 : f32 to vector<1x2xf32>
    %127 = arith.maximumf %125, %126 : vector<1x2xf32>
    %128 = vector.broadcast %127 : vector<1x2xf32> to vector<32x2xf32>
    %129 = arith.mulf %128, %2 : vector<32x2xf32>
    %cst_52 = arith.constant dense<0.000000e+00> : vector<32xf32>
    %130 = vector.multi_reduction <add>, %129, %cst_52 [1] : vector<32x2xf32> to vector<32xf32>
    %131 = vector.shape_cast %130 : vector<32xf32> to vector<32x1xf32>
    %132 = arith.addf %131, %3 : vector<32x1xf32>
    %cst_53 = arith.constant 2.000000e+00 : f32
    %133 = vector.broadcast %cst_53 : f32 to vector<32x1xf32>
    %134 = arith.mulf %133, %132 : vector<32x1xf32>
    %cst_54 = arith.constant dense<0xFF800000> : vector<1xf32>
    %135 = vector.multi_reduction <maximumf>, %134, %cst_54 [0] : vector<32x1xf32> to vector<1xf32>
    %136 = vector.shape_cast %135 : vector<1xf32> to vector<1x1xf32>
    %137 = vector.broadcast %136 : vector<1x1xf32> to vector<32x1xf32>
    %138 = arith.subf %134, %137 : vector<32x1xf32>
    %139 = math.exp %138 : vector<32x1xf32>
    %cst_55 = arith.constant dense<0.000000e+00> : vector<1xf32>
    %140 = vector.multi_reduction <add>, %139, %cst_55 [0] : vector<32x1xf32> to vector<1xf32>
    %141 = vector.shape_cast %140 : vector<1xf32> to vector<1x1xf32>
    %142 = vector.broadcast %141 : vector<1x1xf32> to vector<32x1xf32>
    %143 = arith.divf %139, %142 : vector<32x1xf32>
    %144 = vector.broadcast %143 : vector<32x1xf32> to vector<32x256xf32>
    %145 = arith.mulf %116, %144 : vector<32x256xf32>
    %cst_56 = arith.constant dense<0xFF800000> : vector<256xf32>
    %146 = vector.multi_reduction <maximumf>, %145, %cst_56 [0] : vector<32x256xf32> to vector<256xf32>
    %147 = vector.shape_cast %146 : vector<256xf32> to vector<1x256xf32>
    %cst_57 = arith.constant dense<0.000000e+00> : vector<256xf32>
    %148 = vector.multi_reduction <add>, %145, %cst_57 [0] : vector<32x256xf32> to vector<256xf32>
    %149 = vector.shape_cast %148 : vector<256xf32> to vector<1x256xf32>
    %cst_58 = arith.constant 3.200000e+01 : f32
    %150 = vector.broadcast %cst_58 : f32 to vector<1x256xf32>
    %151 = arith.divf %149, %150 : vector<1x256xf32>
    %152 = tpu.concatenate %36, %73, %110, %147 in 0 : vector<1x256xf32>, vector<1x256xf32>, vector<1x256xf32>, vector<1x256xf32> -> vector<4x256xf32>
    %153 = tpu.concatenate %40, %77, %114, %151 in 0 : vector<1x256xf32>, vector<1x256xf32>, vector<1x256xf32>, vector<1x256xf32> -> vector<4x256xf32>
    %154 = tpu.concatenate %152, %153 in 1 : vector<4x256xf32>, vector<4x256xf32> -> vector<4x512xf32>
    %c0_59 = arith.constant 0 : index
    %c0_60 = arith.constant 0 : index
    %155 = vector.load %arg6[%c0_59, %c0_60] : memref<512x256xf32, #tpu.memory_space<vmem>>, vector<512x256xf32>
    %cst_61 = arith.constant dense<0.000000e+00> : vector<4x256xf32>
    %156 = tpu.matmul %154, %155, %cst_61 {dimension_numbers = #tpu.dot_dimension_numbers<[1], [0], [0], [1], [0, 0, 1, 1], [], []>} : vector<4x512xf32>, vector<512x256xf32>, vector<4x256xf32> -> vector<4x256xf32>
    %c0_62 = arith.constant 0 : index
    %157 = memref.load %arg7[%c0_62] : memref<1xf32, #tpu.memory_space<smem>>
    %158 = vector.broadcast %157 : f32 to vector<4x256xf32>
    %159 = arith.addf %156, %158 : vector<4x256xf32>
    %cst_63 = arith.constant 0.000000e+00 : f32
    %160 = vector.broadcast %cst_63 : f32 to vector<4x256xf32>
    %161 = arith.subf %160, %159 : vector<4x256xf32>
    %162 = math.exp %161 : vector<4x256xf32>
    %cst_64 = arith.constant 1.000000e+00 : f32
    %163 = vector.broadcast %cst_64 : f32 to vector<4x256xf32>
    %164 = arith.addf %163, %162 : vector<4x256xf32>
    %cst_65 = arith.constant 1.000000e+00 : f32
    %165 = vector.broadcast %cst_65 : f32 to vector<4x256xf32>
    %166 = arith.divf %165, %164 : vector<4x256xf32>
    %c0_66 = arith.constant 0 : index
    %c0_67 = arith.constant 0 : index
    %c0_68 = arith.constant 0 : index
    %167 = vector.load %arg1[%c0_66, %c0_67, %c0_68] : memref<4x32x256xf32, #tpu.memory_space<vmem>>, vector<1x32x256xf32>
    %168 = vector.shape_cast %167 : vector<1x32x256xf32> to vector<32x256xf32>
    %169 = vector.broadcast %32 : vector<32x1xf32> to vector<32x256xf32>
    %170 = arith.mulf %168, %169 : vector<32x256xf32>
    %171 = vector.extract_strided_slice %166 {offsets = [0, 0], sizes = [1, 256], strides = [1, 1]} : vector<4x256xf32> to vector<1x256xf32>
    %172 = vector.broadcast %171 : vector<1x256xf32> to vector<32x256xf32>
    %173 = arith.mulf %170, %172 : vector<32x256xf32>
    %174 = arith.addf %168, %173 : vector<32x256xf32>
    %c0_69 = arith.constant 0 : index
    %c0_70 = arith.constant 0 : index
    %c0_71 = arith.constant 0 : index
    %175 = vector.load %arg8[%c0_69, %c0_70, %c0_71] : memref<4x32x256xf32, #tpu.memory_space<vmem>>, vector<1x32x256xf32>
    %176 = vector.shape_cast %175 : vector<1x32x256xf32> to vector<32x256xf32>
    %177 = vector.shape_cast %174 : vector<32x256xf32> to vector<1x32x256xf32>
    tpu.vector_store %arg8[%c0_69, %c0_70, %c0_71], %177 {strides = array<i32>} : memref<4x32x256xf32, #tpu.memory_space<vmem>>, vector<1x32x256xf32>,
    %c1_72 = arith.constant 1 : index
    %c0_73 = arith.constant 0 : index
    %c0_74 = arith.constant 0 : index
    %178 = vector.load %arg1[%c1_72, %c0_73, %c0_74] : memref<4x32x256xf32, #tpu.memory_space<vmem>>, vector<1x32x256xf32>
    %179 = vector.shape_cast %178 : vector<1x32x256xf32> to vector<32x256xf32>
    %180 = vector.broadcast %69 : vector<32x1xf32> to vector<32x256xf32>
    %181 = arith.mulf %179, %180 : vector<32x256xf32>
    %182 = vector.extract_strided_slice %166 {offsets = [1, 0], sizes = [1, 256], strides = [1, 1]} : vector<4x256xf32> to vector<1x256xf32>
    %183 = vector.broadcast %182 : vector<1x256xf32> to vector<32x256xf32>
    %184 = arith.mulf %181, %183 : vector<32x256xf32>
    %185 = arith.addf %179, %184 : vector<32x256xf32>
    %c1_75 = arith.constant 1 : index
    %c0_76 = arith.constant 0 : index
    %c0_77 = arith.constant 0 : index
    %186 = vector.load %arg8[%c1_75, %c0_76, %c0_77] : memref<4x32x256xf32, #tpu.memory_space<vmem>>, vector<1x32x256xf32>
    %187 = vector.shape_cast %186 : vector<1x32x256xf32> to vector<32x256xf32>
    %188 = vector.shape_cast %185 : vector<32x256xf32> to vector<1x32x256xf32>
    tpu.vector_store %arg8[%c1_75, %c0_76, %c0_77], %188 {strides = array<i32>} : memref<4x32x256xf32, #tpu.memory_space<vmem>>, vector<1x32x256xf32>,
    %c2_78 = arith.constant 2 : index
    %c0_79 = arith.constant 0 : index
    %c0_80 = arith.constant 0 : index
    %189 = vector.load %arg1[%c2_78, %c0_79, %c0_80] : memref<4x32x256xf32, #tpu.memory_space<vmem>>, vector<1x32x256xf32>
    %190 = vector.shape_cast %189 : vector<1x32x256xf32> to vector<32x256xf32>
    %191 = vector.broadcast %106 : vector<32x1xf32> to vector<32x256xf32>
    %192 = arith.mulf %190, %191 : vector<32x256xf32>
    %193 = vector.extract_strided_slice %166 {offsets = [2, 0], sizes = [1, 256], strides = [1, 1]} : vector<4x256xf32> to vector<1x256xf32>
    %194 = vector.broadcast %193 : vector<1x256xf32> to vector<32x256xf32>
    %195 = arith.mulf %192, %194 : vector<32x256xf32>
    %196 = arith.addf %190, %195 : vector<32x256xf32>
    %c2_81 = arith.constant 2 : index
    %c0_82 = arith.constant 0 : index
    %c0_83 = arith.constant 0 : index
    %197 = vector.load %arg8[%c2_81, %c0_82, %c0_83] : memref<4x32x256xf32, #tpu.memory_space<vmem>>, vector<1x32x256xf32>
    %198 = vector.shape_cast %197 : vector<1x32x256xf32> to vector<32x256xf32>
    %199 = vector.shape_cast %196 : vector<32x256xf32> to vector<1x32x256xf32>
    tpu.vector_store %arg8[%c2_81, %c0_82, %c0_83], %199 {strides = array<i32>} : memref<4x32x256xf32, #tpu.memory_space<vmem>>, vector<1x32x256xf32>,
    %c3_84 = arith.constant 3 : index
    %c0_85 = arith.constant 0 : index
    %c0_86 = arith.constant 0 : index
    %200 = vector.load %arg1[%c3_84, %c0_85, %c0_86] : memref<4x32x256xf32, #tpu.memory_space<vmem>>, vector<1x32x256xf32>
    %201 = vector.shape_cast %200 : vector<1x32x256xf32> to vector<32x256xf32>
    %202 = vector.broadcast %143 : vector<32x1xf32> to vector<32x256xf32>
    %203 = arith.mulf %201, %202 : vector<32x256xf32>
    %204 = vector.extract_strided_slice %166 {offsets = [3, 0], sizes = [1, 256], strides = [1, 1]} : vector<4x256xf32> to vector<1x256xf32>
    %205 = vector.broadcast %204 : vector<1x256xf32> to vector<32x256xf32>
    %206 = arith.mulf %203, %205 : vector<32x256xf32>
    %207 = arith.addf %201, %206 : vector<32x256xf32>
    %c3_87 = arith.constant 3 : index
    %c0_88 = arith.constant 0 : index
    %c0_89 = arith.constant 0 : index
    %208 = vector.load %arg8[%c3_87, %c0_88, %c0_89] : memref<4x32x256xf32, #tpu.memory_space<vmem>>, vector<1x32x256xf32>
    %209 = vector.shape_cast %208 : vector<1x32x256xf32> to vector<32x256xf32>
    %210 = vector.shape_cast %207 : vector<32x256xf32> to vector<1x32x256xf32>
    tpu.vector_store %arg8[%c3_87, %c0_88, %c0_89], %210 {strides = array<i32>} : memref<4x32x256xf32, #tpu.memory_space<vmem>>, vector<1x32x256xf32>,
    return
  }
  func.func @transform_0(%arg0: i32) -> (i32, i32, i32) {
    %c0_i32 = arith.constant 0 : i32
    %c0_i32_0 = arith.constant 0 : i32
    %c0_i32_1 = arith.constant 0 : i32
    return %arg0, %c0_i32, %c0_i32_0 : i32, i32, i32
  }
  func.func @transform_1(%arg0: i32) -> (i32, i32) {
    %c0_i32 = arith.constant 0 : i32
    %c0_i32_0 = arith.constant 0 : i32
    %c0_i32_1 = arith.constant 0 : i32
    return %c0_i32, %c0_i32_0 : i32, i32
  }
  func.func @transform_2(%arg0: i32) -> (i32, i32) {
    %c0_i32 = arith.constant 0 : i32
    %c0_i32_0 = arith.constant 0 : i32
    %c0_i32_1 = arith.constant 0 : i32
    return %c0_i32, %c0_i32_0 : i32, i32
  }
  func.func @transform_3(%arg0: i32) -> (i32, i32) {
    %c0_i32 = arith.constant 0 : i32
    %c0_i32_0 = arith.constant 0 : i32
    %c0_i32_1 = arith.constant 0 : i32
    return %c0_i32, %c0_i32_0 : i32, i32
  }
  func.func @transform_4(%arg0: i32) -> (i32, i32) {
    %c0_i32 = arith.constant 0 : i32
    %c0_i32_0 = arith.constant 0 : i32
    %c0_i32_1 = arith.constant 0 : i32
    return %c0_i32, %c0_i32_0 : i32, i32
  }
  func.func @transform_5(%arg0: i32) -> (i32, i32) {
    %c0_i32 = arith.constant 0 : i32
    %c0_i32_0 = arith.constant 0 : i32
    %c0_i32_1 = arith.constant 0 : i32
    return %c0_i32, %c0_i32_0 : i32, i32
  }
  func.func @transform_6(%arg0: i32) -> i32 {
    %c0_i32 = arith.constant 0 : i32
    %c0_i32_0 = arith.constant 0 : i32
    return %c0_i32 : i32
  }
  func.func @transform_7(%arg0: i32) -> (i32, i32, i32) {
    %c0_i32 = arith.constant 0 : i32
    %c0_i32_0 = arith.constant 0 : i32
    %c0_i32_1 = arith.constant 0 : i32
    return %arg0, %c0_i32, %c0_i32_0 : i32, i32, i32
  }
}

</mosaic_0001>

<bundles_post_ra>
// kernel: tpu_custom_call.1
= control target key start
LH: loop header
LB: loop body
LE: loop exit
PB: predicated region body
PF: predicated region fallthrough
CT: control target
= control target key end

     0   :  { %s3149_s0 = inlined_call_operand.hbm [shape: f32[8,32,256], index: 0, kind: input, shape index: {}]   ;;  %s3150_s1 = inlined_call_operand.vmem [shape: f32[32,2], index: 1, kind: input, shape index: {}]   ;;  %s3151_s2 = inlined_call_operand.vmem [shape: f32[1,2], index: 2, kind: input, shape index: {}]   ;;  %s3152_s3 = inlined_call_operand.vmem [shape: f32[32,2], index: 3, kind: input, shape index: {}]   ;;  %s3153_s4 = inlined_call_operand.vmem [shape: f32[32,1], index: 4, kind: input, shape index: {}]   ;;  %s3154_s5 = inlined_call_operand.hbm [shape: f32[512,256], index: 5, kind: input, shape index: {}]   ;;  %s3155_s6 = inlined_call_operand.<no memory space> [shape: f32[1], index: 6, kind: input, shape index: {}]   ;;  %s3156_s7 = inlined_call_operand.hbm [shape: f32[8,32,256], index: 7, kind: output, shape index: {}]  }
   0x1   :  { %12 = sst [smem:[#allocation2]] %s3155_s6 }
   0x2   :  { %13 = vsyncpa [#allocation4], 0 }
   0x3   :  { %15 = vsyncpa [#allocation4 + $0x1], 0 }
   0x4   :  { %16 = vsyncpa [#allocation7], 0 }
   0x5   :  { %17 = vsyncpa [#allocation5], 0 }
   0x6   :  { %19 = vsyncpa [#allocation5 + $0x1], 0  ;;  %s2183_s26 = smov 0   ;;  %s2185_s27 = smov 0  }
   0x7   :  { %s2187_s28 = smov 0   ;;  %s2189_s29 = smov 0  }
   0x8 LB: > { %s2204_s6 = sadd.s32 4294967295, %s2130_s29   ;;  %s1632_s30 = sadd.s32 4294967294, %s2130_s29   ;;  %s2130_s29 = sphi %s2189_s29, %s3264_s29   ;;  %s2126_s28 = sphi %s2187_s28, %s3263_s28   ;;  %s2122_s27 = sphi %s2185_s27, %s3262_s27   ;;  %s2118_s26 = sphi %s2183_s26, %s3261_s26  }
   0x9   : > { %p45_p0 = scmp.ne.s32.totalorder %s2122_s27, %s2118_s26  ;;  %p3157_p1 = scmp.eq.s32.totalorder %s2204_s6, 0 }
   0xa   : > { %p201_p3 = scmp.eq.s32.totalorder %s1632_s30, 1  ;;  %p1633_p5 = scmp.ge.s32.totalorder %s2130_s29, 1 }
   0xb   : > { %p2213_p4 = por %p3157_p1, %p45_p0  ;;  %p208_p7 = scmp.lt.s32.totalorder %s2130_s29, 3 }
   0xc   : > { %p2218_p6 = por %p201_p3, %p45_p0  ;;  %s2132_s11 = smov [#allocation6]  }
   0xd   : > { %s3188_s8 = scalar_select %p2213_p4, 1, 0 }
   0xe   : > { %s3189_s9 = scalar_select %p2218_p6, 1, 0 }
   0xf   : > { %p2223_p8 = pnand %p1633_p5, %p208_p7  ;;  %s232_s12 = sshll.u32 %s2132_s11, 4  ;;  %s2227_s12 = int_to_ptr.vmem [resolvable:$true] %s232_s12 }
  0x10   : > { %s2239_s14 = sadd.s32 1, %s2130_s29   ;;  %s32_s15 = sadd.s32 1, %s2126_s28 }
  0x11   : > { %s3190_s10 = scalar_select %p2223_p8, 1, 0 }
  0x12   : > { %p1866_p9 = pneg %p2223_p8  ;;  %s29_s16 = ssub.s32 %s2130_s29, %s2239_s14 }
  0x13   : > { %s2002_s19 = scalar_lea.hbm %s3154_s5, 16384 }
  0x14   : > { %p2234_p11 = pnand %p1866_p9, %p3157_p1  ;;  %p2003_p12 = scmp.ne.s32.totalorder %s3154_s5, %s2002_s19 }
  0x15   : > { %p2009_p5 = scmp.lt.u32.totalorder %s2002_s19, %s3154_s5 }
  0x16   : > { %p2004_p13 = pneg %p2234_p11 }
  0x18   : > { %p2005_p0 = pnand %p2004_p13, %p2003_p12 }
  0x1a   : > { %p2006_p3 = pneg %p2005_p0 }
  0x1c   : > { %p2011_p7 = pnand %p2009_p5, %p2006_p3 }
  0x1e   : > { %2014 = shalt.err (!%p2011_p7)
}
  0x1f   : > { %s2015_s24 = scalar_lea.vmem %s2227_s12, 16384  ;;  %p2023_p2 = scmp.lt.s32.totalorder %s2227_s12, %s2227_s12 }
  0x20   : > { %p2016_p9 = scmp.ne.s32.totalorder %s2227_s12, %s2015_s24  ;;  %p2024_p6 = scmp.lt.s32.totalorder %s2015_s24, %s2015_s24 }
  0x22   : > { %p2018_p10 = pnand %p2016_p9, %p2004_p13  ;;  %p2025_p4 = por %p2024_p6, %p2023_p2 }
  0x24   : > { %p2019_p1 = pneg %p2018_p10 }
  0x26   : > { %p2026_p8 = pnand %p2025_p4, %p2019_p1 }
  0x28   : > { %2029 = shalt.err (!%p2026_p8)
}
  0x29   : > { %s2133_s25 = smov 256   ;;  %s2134_s30 = smov 16  }
  0x2a   : > { %1869 = dma.hbm_to_vmem [thread:$0]  (!%p2234_p11), %s3154_s5, 16384, %s2227_s12, [#allocation7], %s2133_s25, %s2133_s25, %s2134_s30  }
  0x2b   : > { %p30_p1 = scmp.eq.s32.totalorder %s29_s16, 0  ;;  %p39_p2 = scmp.ne.s32.totalorder %s2126_s28, %s2122_s27 }
  0x2c   : > { %p40_p4 = scmp.eq.s32.totalorder %s2130_s29, 0  ;;  %p1879_p6 = scmp.lt.s32.totalorder %s2130_s29, 2 }
  0x2d   : > { %s2273_s18 = scalar_select %p30_p1, %s2126_s28, %s32_s15  }
  0x2e   : > { %p41_p8 = por %p40_p4, %p39_p2  ;;  %p3192_p10 = scmp.eq.s32.totalorder %s2204_s6, 1 }
  0x2f   : > { %s249_s13 = sand.u32 1, %s2126_s28   ;;  %s1723_s20 = sshll.u32 %s2130_s29, 12 }
  0x30   : > { %p2277_p12 = por %p3192_p10, %p39_p2  ;;  %s1636_s21 = sshll.u32 %s249_s13, 8 }
  0x31   : > { %s2286_s24 = scalar_lea.hbm %s3149_s0, %s1723_s20  ;;  %s253_s12 = scalar_lea.vmem [#allocation3], %s1636_s21 }
  0x32   : > { %s261_s15 = sshll.u32 %s253_s12, 4  ;;  %p2288_p11 = pnand %p1879_p6, %p41_p8  ;;  %s2292_s15 = int_to_ptr.vmem [resolvable:$true] %s261_s15 }
  0x33   : > { %s2294_s11 = scalar_lea.sflag [#allocation4], %s249_s13  ;;  %s2030_s17 = scalar_lea.hbm %s2286_s24, 4096 }
  0x34   : > { %p2031_p13 = scmp.ne.s32.totalorder %s2286_s24, %s2030_s17  ;;  %p2032_p0 = pneg %p2288_p11 }
  0x35   : > { %s2035_s22 = scalar_lea.hbm %s3149_s0, 8192  ;;  %p2036_p7 = scmp.lt.u32.totalorder %s2286_s24, %s3149_s0 }
  0x36   : > { %p2033_p3 = pnand %p2032_p0, %p2031_p13  ;;  %p2037_p9 = scmp.lt.u32.totalorder %s2035_s22, %s2030_s17 }
  0x37   : > { %p2039_p2 = scmp.lt.u32.totalorder %s2030_s17, %s2286_s24 }
  0x38   : > { %p2034_p5 = pneg %p2033_p3  ;;  %p2038_p1 = por %p2037_p9, %p2036_p7 }
  0x3a   : > { %p2040_p4 = por %p2039_p2, %p2038_p1 }
  0x3c   : > { %p2041_p6 = pnand %p2040_p4, %p2034_p5 }
  0x3e   : > { %2044 = shalt.err (!%p2041_p6)
}
  0x3f   : > { %s2045_s13 = scalar_lea.vmem %s2292_s15, 4096  ;;  %s2135_s20 = smov [#allocation3]  }
  0x40   : > { %p2046_p8 = scmp.ne.s32.totalorder %s2292_s15, %s2045_s13  ;;  %s2050_s21 = sshll.u32 %s2135_s20, 4  ;;  %s2051_s21 = int_to_ptr.vmem [resolvable:$false] %s2050_s21 }
  0x41   : > { %s2052_s23 = scalar_lea.vmem %s2051_s21, 8192  ;;  %p2053_p3 = scmp.lt.s32.totalorder %s2292_s15, %s2051_s21 }
  0x42   : > { %p2048_p10 = pnand %p2046_p8, %p2032_p0  ;;  %p2054_p7 = scmp.lt.s32.totalorder %s2052_s23, %s2045_s13 }
  0x44   : > { %p2049_p13 = pneg %p2048_p10  ;;  %p2055_p9 = por %p2054_p7, %p2053_p3 }
  0x46   : > { %p2056_p1 = pnand %p2055_p9, %p2049_p13 }
  0x48   : > { %2059 = shalt.err (!%p2056_p1)
}
  0x49   : > { %1873 = dma.hbm_to_vmem [thread:$0]  (!%p2288_p11), %s2286_s24, 4096, %s2292_s15, %s2294_s11, %s2133_s25, %s2133_s25, %s2134_s30  }
  0x4a   : > { %p3195_p0 = scmp.ne.s32.totalorder %s3190_s10, 0 }
  0x4c   : > { %273 = sbr.rel (%p3195_p0) target bundleno = 985 (0x3d9), region = 48 }
  0x53   : > { %s2328_s17 = sand.u32 1, %s2122_s27   ;;  %p3196_p5 = scmp.ne.s32.totalorder %s3188_s8, 0 }
  0x54   : > { %s1641_s22 = sshll.u32 %s2328_s17, 8  ;;  %s276_s12 = scalar_lea.sflag [#allocation4], %s2328_s17 }
  0x55   : > { %s2334_s16 = scalar_lea.vmem [#allocation3], %s1641_s22 }
  0x56   : > { %2105 = dma.done.wait (%p3196_p5), %s276_s12, 4096  }
  0x57   : > { %2107 = vsyncadd (%p3196_p5), %s276_s12, 4294963200  ;;  %p3197_p11 = scmp.eq.s32.totalorder %s2204_s6, 0 }
  0x59   : > { %2109 = dma.done.wait (%p3197_p11), [#allocation7], 16384   ;;  %p3198_p2 = pmov %p3197_p11 }
  0x5a   : > { %v1644_v0 = vld [vmem:[%s2334_s16 + $0x40] sm:$0xff]  ;;  %v1645_v1 = vld [vmem:[%s2334_s16 + $0x48] sm:$0xff]  ;;  %v1646_v5 = vld [vmem:[%s2334_s16 + $0x50] sm:$0xff]  ;;  %vm358_vm0 = vcmask 15360   ;;  %vm402_vm1 = vcmask 7168   ;;  %vm1056_vm2 = vcmask 1040384  }
  0x5b   : > { %2111 = vsyncadd (%p3198_p2), [#allocation7], 4294950912  ;;  %v329_v2 = vld [vmem:[%s2334_s16] sm:$0xff]  ;;  %v522_v3 = vadd.f32 %v1645_v1, %v1644_v0  ;;  %v330_v4 = vld [vmem:[%s2334_s16 + $0x8] sm:$0xff]  ;;  %vm1059_vm3 = vcmask 1041408   ;;  %vm1062_vm4 = vcmask 1042432  }
  0x5c   : > { %v1647_v6 = vld [vmem:[%s2334_s16 + $0x58] sm:$0xff]  ;;  %v337_v7 = vadd.f32 %v330_v4, %v329_v2  ;;  %v331_v8 = vld [vmem:[%s2334_s16 + $0x10] sm:$0xff]  ;;  %v1652_v14 = vld [vmem:[%s2334_s16 + $0x80] sm:$0xff]  ;;  %s1199_s25 = sld [smem:[#allocation2]]  ;;  %s1535_s11 = scalar_lea.sflag [#allocation5], %s2328_s17 }
  0x5d   : > { %v332_v9 = vld [vmem:[%s2334_s16 + $0x18] sm:$0xff]  ;;  %523 = vadd.xlane.f32.xlu1 %v522_v3  ;;  %v525_v10 = vadd.f32 %v1647_v6, %v1646_v5  ;;  %v1654_v12 = vld [vmem:[%s2334_s16 + $0x90] sm:$0xff]  ;;  %v1653_v15 = vld [vmem:[%s2334_s16 + $0x88] sm:$0xff]  ;;  %s2137_s20 = smov [#allocation8]  }
  0x5e   : > { %338 = vadd.xlane.f32.xlu0 %v337_v7  ;;  %v340_v11 = vadd.f32 %v332_v9, %v331_v8  ;;  %v1655_v13 = vld [vmem:[%s2334_s16 + $0x98] sm:$0xff]  ;;  %v703_v17 = vadd.f32 %v1653_v15, %v1652_v14  ;;  %v1648_v18 = vld [vmem:[%s2334_s16 + $0x60] sm:$0xff]  ;;  %v1649_v19 = vld [vmem:[%s2334_s16 + $0x68] sm:$0xff]  ;;  %s2064_s21 = sshll.u32 %s2137_s20, 4  ;;  %s2065_s21 = int_to_ptr.vmem [resolvable:$false] %s2064_s21 }
  0x5f   : > { %v706_v16 = vadd.f32 %v1655_v13, %v1654_v12  ;;  %v333_v20 = vld [vmem:[%s2334_s16 + $0x20] sm:$0xff]  ;;  %v334_v21 = vld [vmem:[%s2334_s16 + $0x28] sm:$0xff]  ;;  %v528_v22 = vadd.f32 %v1649_v19, %v1648_v18  ;;  %v1662_v24 = vld [vmem:[%s2334_s16 + $0xd0] sm:$0xff]  ;;  %s2066_s23 = scalar_lea.vmem %s2065_s21, 8192 }
  0x60   : > { %v343_v23 = vadd.f32 %v334_v21, %v333_v20  ;;  %v1663_v25 = vld [vmem:[%s2334_s16 + $0xd8] sm:$0xff]  ;;  %v1660_v26 = vld [vmem:[%s2334_s16 + $0xc0] sm:$0xff]  ;;  %v1661_v27 = vld [vmem:[%s2334_s16 + $0xc8] sm:$0xff] }
  0x61   : > { %526 = vadd.xlane.f32.xlu1 %v525_v10  ;;  %v887_v28 = vadd.f32 %v1663_v25, %v1662_v24  ;;  %v884_v29 = vadd.f32 %v1661_v27, %v1660_v26  ;;  %v335_v30 = vld [vmem:[%s2334_s16 + $0x30] sm:$0xff]  ;;  %v336_v31 = vld [vmem:[%s2334_s16 + $0x38] sm:$0xff]  ;;  %v1656_v32 = vld [vmem:[%s2334_s16 + $0xa0] sm:$0xff] }
  0x62   : > { %341 = vadd.xlane.f32.xlu0 %v340_v11  ;;  %v1657_v33 = vld [vmem:[%s2334_s16 + $0xa8] sm:$0xff]  ;;  %v346_v34 = vadd.f32 %v336_v31, %v335_v30  ;;  %v1664_v36 = vld [vmem:[%s2334_s16 + $0xe0] sm:$0xff]  ;;  %v1650_v38 = vld [vmem:[%s2334_s16 + $0x70] sm:$0xff] }
  0x63   : > { %v709_v35 = vadd.f32 %v1657_v33, %v1656_v32  ;;  %v1665_v37 = vld [vmem:[%s2334_s16 + $0xe8] sm:$0xff]  ;;  %v1651_v39 = vld [vmem:[%s2334_s16 + $0x78] sm:$0xff]  ;;  %v1666_v42 = vld [vmem:[%s2334_s16 + $0xf0] sm:$0xff] }
  0x64   : > { %v890_v40 = vadd.f32 %v1665_v37, %v1664_v36  ;;  %v531_v41 = vadd.f32 %v1651_v39, %v1650_v38  ;;  %v1667_v43 = vld [vmem:[%s2334_s16 + $0xf8] sm:$0xff]  ;;  %v1658_v44 = vld [vmem:[%s2334_s16 + $0xb0] sm:$0xff]  ;;  %v317_v56 = vld [vmem:[%s3150_s1 + $0x8] sm:$0xff] }
  0x65   : > { %707 = vadd.xlane.f32.xlu1 %v706_v16  ;;  %v1659_v45 = vld [vmem:[%s2334_s16 + $0xb8] sm:$0xff]  ;;  %v893_v46 = vadd.f32 %v1667_v43, %v1666_v42  ;;  %v316_v59 = vld [vmem:[%s3150_s1] sm:$0xff]  ;;  %v318_v60 = vld [vmem:[%s3150_s1 + $0x10] sm:$0xff] }
  0x66   : > { %704 = vadd.xlane.f32.xlu0 %v703_v17  ;;  %v712_v47 = vadd.f32 %v1659_v45, %v1658_v44  ;;  %v319_v15 = vld [vmem:[%s3150_s1 + $0x18] sm:$0xff] }
  0x69   : > { %529 = vadd.xlane.f32.xlu1 %v528_v22 }
  0x6a   : > { %344 = vadd.xlane.f32.xlu0 %v343_v23 }
  0x6d   : > { %888 = vadd.xlane.f32.xlu1 %v887_v28 }
  0x6e   : > { %885 = vadd.xlane.f32.xlu0 %v884_v29 }
  0x71   : > { %347 = vadd.xlane.f32.xlu1 %v346_v34 }
  0x72   : > { %710 = vadd.xlane.f32.xlu0 %v709_v35 }
  0x75   : > { %891 = vadd.xlane.f32.xlu1 %v890_v40 }
  0x76   : > { %532 = vadd.xlane.f32.xlu0 %v531_v41 }
  0x79   : > { %894 = vadd.xlane.f32.xlu1 %v893_v46 }
  0x7a   : > { %713 = vadd.xlane.f32.xlu0 %v712_v47 }
  0xea   : > { %v524_v48 = vpop.xlane.xlu1 %523 }
  0xeb   : > { %v339_v49 = vpop.xlane.xlu0 %338  ;;  %v534_v62 = vmul.f32 0.00390625, %v524_v48 }
  0xec   : > { %v350_v54 = vmul.f32 0.00390625, %v339_v49 }
  0xed   : > { %v538_v8 = vmul.f32 %v534_v62, %v316_v59  ;;  %v374_v62 = vlaneseq }
  0xee   : > { %v527_v50 = vpop.xlane.xlu1 %526  ;;  %v354_v63 = vmul.f32 %v350_v54, %v316_v59 }
  0xef   : > { %v342_v51 = vpop.xlane.xlu0 %341  ;;  %v535_v1 = vmul.f32 0.00390625, %v527_v50  ;;  %v542_v24 = vsel %vm358_vm0, %v538_v8, 0.0 }
  0xf0   : > { %v351_v55 = vmul.f32 0.00390625, %v342_v51  ;;  %v359_v9 = vsel %vm358_vm0, %v354_v63, 0.0 }
  0xf1   : > { %v539_v11 = vmul.f32 %v535_v1, %v317_v56 }
  0xf2   : > { %v708_v52 = vpop.xlane.xlu1 %707  ;;  %v355_v0 = vmul.f32 %v351_v55, %v317_v56 }
  0xf3   : > { %v705_v53 = vpop.xlane.xlu0 %704  ;;  %v716_v12 = vmul.f32 0.00390625, %v708_v52  ;;  %v543_v26 = vsel %vm358_vm0, %v539_v11, 0.0 }
  0xf4   : > { %v360_v10 = vsel %vm358_vm0, %v355_v0, 0.0  ;;  %v715_v13 = vmul.f32 0.00390625, %v705_v53  ;;  %v544_v40 = vadd.f32 %v543_v26, %v542_v24  ;;  %v322_v26 = vld [vmem:[%s3152_s3 + $0x8] sm:$0xff] }
  0xf5   : > { %v361_v21 = vadd.f32 %v360_v10, %v359_v9  ;;  %v720_v27 = vmul.f32 %v716_v12, %v317_v56  ;;  %v2404_v9 = vshrl.u32 %v374_v62, 7  ;;  %v320_v12 = vld [vmem:[%s3151_s2] sm:$0x1] }
  0xf6   : > { %v530_v57 = vpop.xlane.xlu1 %529  ;;  %v719_v28 = vmul.f32 %v715_v13, %v316_v59 }
  0xf7   : > { %v345_v58 = vpop.xlane.xlu0 %344  ;;  %v536_v3 = vmul.f32 0.00390625, %v530_v57  ;;  %v724_v42 = vsel %vm358_vm0, %v720_v27, 0.0  ;;  %v321_v27 = vld [vmem:[%s3152_s3] sm:$0xff] }
  0xf8   : > { %v352_v61 = vmul.f32 0.00390625, %v345_v58  ;;  %v723_v43 = vsel %vm358_vm0, %v719_v28, 0.0 }
  0xf9   : > { %v540_v16 = vmul.f32 %v536_v3, %v318_v60 }
  0xfa   : > { %v889_v2 = vpop.xlane.xlu1 %888  ;;  %v356_v4 = vmul.f32 %v352_v61, %v318_v60 }
  0xfb   : > { %v897_v5 = vmul.f32 0.00390625, %v889_v2  ;;  %v886_v6 = vpop.xlane.xlu0 %885  ;;  %v545_v31 = vsel %vm358_vm0, %v540_v16, 0.0 }
  0xfc   : > { %v896_v7 = vmul.f32 0.00390625, %v886_v6  ;;  %v362_v17 = vsel %vm358_vm0, %v356_v4, 0.0  ;;  %v546_v47 = vadd.f32 %v545_v31, %v544_v40  ;;  %v323_v31 = vld [vmem:[%s3152_s3 + $0x10] sm:$0xff] }
  0xfd   : > { %v901_v18 = vmul.f32 %v897_v5, %v317_v56  ;;  %v363_v29 = vadd.f32 %v362_v17, %v361_v21  ;;  %v725_v56 = vadd.f32 %v724_v42, %v723_v43 }
  0xfe   : > { %v348_v14 = vpop.xlane.xlu1 %347  ;;  %v900_v22 = vmul.f32 %v896_v7, %v316_v59 }
  0xff   : > { %v353_v19 = vmul.f32 0.00390625, %v348_v14  ;;  %v711_v20 = vpop.xlane.xlu0 %710  ;;  %v905_v32 = vsel %vm358_vm0, %v901_v18, 0.0 }
 0x100   : > { %v717_v23 = vmul.f32 0.00390625, %v711_v20  ;;  %v904_v36 = vsel %vm358_vm0, %v900_v22, 0.0 }
 0x101   : > { %v357_v25 = vmul.f32 %v353_v19, %v319_v15  ;;  %v906_v48 = vadd.f32 %v905_v32, %v904_v36  ;;  %v2410_v19 = vsub.s32 0, %v2404_v9 }
 0x102   : > { %v892_v30 = vpop.xlane.xlu1 %891  ;;  %v721_v38 = vmul.f32 %v717_v23, %v318_v60 }
 0x103   : > { %v364_v33 = vsel %vm358_vm0, %v357_v25, 0.0  ;;  %v898_v34 = vmul.f32 0.00390625, %v892_v30  ;;  %v533_v35 = vpop.xlane.xlu0 %532 }
 0x104   : > { %v365_v37 = vadd.f32 %v364_v33, %v363_v29  ;;  %v537_v39 = vmul.f32 0.00390625, %v533_v35  ;;  %v726_v53 = vsel %vm358_vm0, %v721_v38, 0.0  ;;  %v324_v29 = vld [vmem:[%s3152_s3 + $0x18] sm:$0xff] }
 0x105   : > { %v902_v41 = vmul.f32 %v898_v34, %v318_v60  ;;  %v727_v63 = vadd.f32 %v726_v53, %v725_v56 }
 0x106   : > { %v366_v44 = vrot.slane %v365_v37, 4  ;;  %v541_v45 = vmul.f32 %v537_v39, %v319_v15  ;;  %v895_v46 = vpop.xlane.xlu1 %894 }
 0x107   : > { %v907_v49 = vsel %vm358_vm0, %v902_v41, 0.0  ;;  %v899_v50 = vmul.f32 0.00390625, %v895_v46  ;;  %v714_v51 = vpop.xlane.xlu0 %713 }
 0x108   : > { %v367_v52 = vadd.f32 %v366_v44, %v365_v37  ;;  %v547_v54 = vsel %vm358_vm0, %v541_v45, 0.0  ;;  %v718_v55 = vmul.f32 0.00390625, %v714_v51  ;;  %v908_v60 = vadd.f32 %v907_v49, %v906_v48 }
 0x109   : > { %v548_v57 = vadd.f32 %v547_v54, %v546_v47  ;;  %v903_v58 = vmul.f32 %v899_v50, %v319_v15 }
 0x10a   : > { %v368_v59 = vrot.slane %v367_v52, 2  ;;  %v722_v61 = vmul.f32 %v718_v55, %v319_v15 }
 0x10b   : > { %v549_v0 = vrot.slane %v548_v57, 4  ;;  %v909_v1 = vsel %vm358_vm0, %v903_v58, 0.0 }
 0x10c   : > { %v369_v2 = vadd.f32 %v368_v59, %v367_v52  ;;  %v910_v3 = vadd.f32 %v909_v1, %v908_v60  ;;  %v728_v4 = vsel %vm358_vm0, %v722_v61, 0.0 }
 0x10d   : > { %v550_v5 = vadd.f32 %v549_v0, %v548_v57  ;;  %v729_v6 = vadd.f32 %v728_v4, %v727_v63 }
 0x10e   : > { %v370_v7 = vrot.slane %v369_v2, 1  ;;  %v911_v8 = vrot.slane %v910_v3, 4 }
 0x10f   : > { %v551_v10 = vrot.slane %v550_v5, 2  ;;  %v730_v11 = vrot.slane %v729_v6, 4 }
 0x110   : > { %v371_v13 = vadd.f32 %v370_v7, %v369_v2  ;;  %v912_v14 = vadd.f32 %v911_v8, %v910_v3 }
 0x111   : > { %v552_v15 = vadd.f32 %v551_v10, %v550_v5  ;;  %v731_v16 = vadd.f32 %v730_v11, %v729_v6 }
 0x112   : > { %v913_v17 = vrot.slane %v912_v14, 2  ;;  %v372_v18 = vadd.f32 %v371_v13, %v320_v12  ;;  %v2136_v13 = vmov 0  }
 0x113   : > { %v553_v20 = vrot.slane %v552_v15, 1  ;;  %v732_v21 = vrot.slane %v731_v16, 2  ;;  %1921 = vset.pattern.permute.xlu1 %v2136_v13  ;;  %1920 = vset.pattern.permute.xlu0 %v2136_v13 }
 0x114   : > { %v373_v22 = vmax.f32 %v372_v18, 0.0  ;;  %v914_v24 = vadd.f32 %v913_v17, %v912_v14  ;;  %v2447_v14 = vld [vmem:[%s3153_s4 + $0x8] sm:$0xff] }
 0x115   : > { %v554_v23 = vadd.f32 %v553_v20, %v552_v15  ;;  %v733_v25 = vadd.f32 %v732_v21, %v731_v16  ;;  %v2452_v15 = vld [vmem:[%s3153_s4] sm:$0xff]  ;;  %v2459_v21 = vld [vmem:[%s3153_s4 + $0x18] sm:$0xff] }
 0x116   : > { %v377_v28 = vrot.slane %v373_v22, %v2410_v19  ;;  %v915_v35 = vrot.slane %v914_v24, 1  ;;  %v2464_v22 = vld [vmem:[%s3153_s4 + $0x10] sm:$0xff] }
 0x117   : > { %v734_v30 = vrot.slane %v733_v25, 1  ;;  %v555_v32 = vadd.f32 %v554_v23, %v320_v12 }
 0x118   : > { %v379_v33 = vmul.f32 %v377_v28, %v322_v26  ;;  %v378_v34 = vmul.f32 %v377_v28, %v321_v27  ;;  %v381_v37 = vmul.f32 %v377_v28, %v324_v29  ;;  %v380_v41 = vmul.f32 %v377_v28, %v323_v31 }
 0x119   : > { %v735_v36 = vadd.f32 %v734_v30, %v733_v25  ;;  %v556_v38 = vmax.f32 %v555_v32, 0.0  ;;  %v916_v44 = vadd.f32 %v915_v35, %v914_v24 }
 0x11a   : > { %v385_v39 = vsel %vm358_vm0, %v379_v33, 0.0  ;;  %v382_v40 = vsel %vm358_vm0, %v378_v34, 0.0  ;;  %v391_v45 = vsel %vm358_vm0, %v381_v37, 0.0  ;;  %v388_v46 = vsel %vm358_vm0, %v380_v41, 0.0 }
 0x11b   : > { %386 = vadd.xlane.f32.xlu1 %v385_v39  ;;  %383 = vadd.xlane.f32.xlu0 %v382_v40  ;;  %v560_v42 = vrot.slane %v556_v38, %v2410_v19  ;;  %v736_v43 = vadd.f32 %v735_v36, %v320_v12  ;;  %v917_v51 = vadd.f32 %v916_v44, %v320_v12 }
 0x11d   : > { %v562_v47 = vmul.f32 %v560_v42, %v322_v26  ;;  %v561_v48 = vmul.f32 %v560_v42, %v321_v27  ;;  %v737_v49 = vmax.f32 %v736_v43, 0.0  ;;  %v564_v50 = vmul.f32 %v560_v42, %v324_v29 }
 0x11e   : > { %v563_v54 = vmul.f32 %v560_v42, %v323_v31  ;;  %v918_v56 = vmax.f32 %v917_v51, 0.0 }
 0x11f   : > { %392 = vadd.xlane.f32.xlu1 %v391_v45  ;;  %389 = vadd.xlane.f32.xlu0 %v388_v46  ;;  %v568_v52 = vsel %vm358_vm0, %v562_v47, 0.0  ;;  %v565_v53 = vsel %vm358_vm0, %v561_v48, 0.0  ;;  %v741_v55 = vrot.slane %v737_v49, %v2410_v19  ;;  %v574_v57 = vsel %vm358_vm0, %v564_v50, 0.0 }
 0x120   : > { %v571_v58 = vsel %vm358_vm0, %v563_v54, 0.0  ;;  %v922_v61 = vrot.slane %v918_v56, %v2410_v19 }
 0x121   : > { %v743_v59 = vmul.f32 %v741_v55, %v322_v26  ;;  %v742_v60 = vmul.f32 %v741_v55, %v321_v27  ;;  %v745_v0 = vmul.f32 %v741_v55, %v324_v29  ;;  %v744_v1 = vmul.f32 %v741_v55, %v323_v31 }
 0x122   : > { %v924_v4 = vmul.f32 %v922_v61, %v322_v26  ;;  %v923_v5 = vmul.f32 %v922_v61, %v321_v27  ;;  %v926_v8 = vmul.f32 %v922_v61, %v324_v29  ;;  %v925_v10 = vmul.f32 %v922_v61, %v323_v31 }
 0x123   : > { %569 = vadd.xlane.f32.xlu1 %v568_v52  ;;  %566 = vadd.xlane.f32.xlu0 %v565_v53  ;;  %v749_v62 = vsel %vm358_vm0, %v743_v59, 0.0  ;;  %v746_v63 = vsel %vm358_vm0, %v742_v60, 0.0  ;;  %v755_v2 = vsel %vm358_vm0, %v745_v0, 0.0  ;;  %v752_v3 = vsel %vm358_vm0, %v744_v1, 0.0 }
 0x124   : > { %v930_v6 = vsel %vm358_vm0, %v924_v4, 0.0  ;;  %v927_v7 = vsel %vm358_vm0, %v923_v5, 0.0  ;;  %v936_v11 = vsel %vm358_vm0, %v926_v8, 0.0  ;;  %v933_v12 = vsel %vm358_vm0, %v925_v10, 0.0 }
 0x127   : > { %575 = vadd.xlane.f32.xlu1 %v574_v57  ;;  %572 = vadd.xlane.f32.xlu0 %v571_v58 }
 0x12b   : > { %750 = vadd.xlane.f32.xlu1 %v749_v62  ;;  %747 = vadd.xlane.f32.xlu0 %v746_v63 }
 0x12f   : > { %756 = vadd.xlane.f32.xlu1 %v755_v2  ;;  %753 = vadd.xlane.f32.xlu0 %v752_v3 }
 0x133   : > { %931 = vadd.xlane.f32.xlu1 %v930_v6  ;;  %928 = vadd.xlane.f32.xlu0 %v927_v7 }
 0x137   : > { %937 = vadd.xlane.f32.xlu1 %v936_v11  ;;  %934 = vadd.xlane.f32.xlu0 %v933_v12 }
 0x1a8   : > { %v387_v16 = vpop.xlane.xlu1 %386  ;;  %v384_v17 = vpop.xlane.xlu0 %383 }
 0x1a9   : > { %v395_v18 = vadd.f32 %v387_v16, %v2447_v14  ;;  %v394_v20 = vadd.f32 %v384_v17, %v2452_v15 }
 0x1ab   : > { %v2466_v23 = vmul.f32 2.0, %v395_v18  ;;  %v2468_v24 = vmul.f32 2.0, %v394_v20 }
 0x1ac   : > { %v393_v25 = vpop.xlane.xlu1 %392  ;;  %v390_v26 = vpop.xlane.xlu0 %389 }
 0x1ad   : > { %v397_v27 = vadd.f32 %v393_v25, %v2459_v21  ;;  %v396_v28 = vadd.f32 %v390_v26, %v2464_v22  ;;  %v404_v29 = vsel %vm402_vm1, %v2466_v23, -inf  ;;  %v403_v30 = vsel %vm402_vm1, %v2468_v24, -inf }
 0x1ae   : > { %v407_v39 = vmax.f32 %v403_v30, %v404_v29 }
 0x1af   : > { %v2476_v31 = vmul.f32 2.0, %v397_v27  ;;  %v2478_v32 = vmul.f32 2.0, %v396_v28 }
 0x1b0   : > { %v570_v33 = vpop.xlane.xlu1 %569  ;;  %v567_v34 = vpop.xlane.xlu0 %566 }
 0x1b1   : > { %v406_v35 = vsel %vm402_vm1, %v2476_v31, -inf  ;;  %v405_v36 = vsel %vm402_vm1, %v2478_v32, -inf  ;;  %v578_v37 = vadd.f32 %v570_v33, %v2447_v14  ;;  %v577_v38 = vadd.f32 %v567_v34, %v2452_v15 }
 0x1b2   : > { %v408_v40 = vmax.f32 %v405_v36, %v406_v35 }
 0x1b3   : > { %v2486_v41 = vmul.f32 2.0, %v578_v37  ;;  %v2488_v42 = vmul.f32 2.0, %v577_v38 }
 0x1b4   : > { %v409_v43 = vmax.f32 %v407_v39, %v408_v40  ;;  %v576_v44 = vpop.xlane.xlu1 %575  ;;  %v573_v45 = vpop.xlane.xlu0 %572 }
 0x1b5   : > { %v580_v46 = vadd.f32 %v576_v44, %v2459_v21  ;;  %v579_v47 = vadd.f32 %v573_v45, %v2464_v22  ;;  %v586_v49 = vsel %vm402_vm1, %v2486_v41, -inf  ;;  %v585_v50 = vsel %vm402_vm1, %v2488_v42, -inf }
 0x1b6   : > { %v410_v48 = vrot.slane %v409_v43, 4  ;;  %v589_v61 = vmax.f32 %v585_v50, %v586_v49 }
 0x1b7   : > { %v2496_v51 = vmul.f32 2.0, %v580_v46  ;;  %v2498_v52 = vmul.f32 2.0, %v579_v47 }
 0x1b8   : > { %v411_v53 = vmax.f32 %v409_v43, %v410_v48  ;;  %v751_v54 = vpop.xlane.xlu1 %750  ;;  %v748_v55 = vpop.xlane.xlu0 %747 }
 0x1b9   : > { %v588_v56 = vsel %vm402_vm1, %v2496_v51, -inf  ;;  %v587_v57 = vsel %vm402_vm1, %v2498_v52, -inf  ;;  %v759_v58 = vadd.f32 %v751_v54, %v2447_v14  ;;  %v758_v59 = vadd.f32 %v748_v55, %v2452_v15 }
 0x1ba   : > { %v412_v60 = vrot.slane %v411_v53, 2  ;;  %v590_v62 = vmax.f32 %v587_v57, %v588_v56 }
 0x1bb   : > { %v2506_v63 = vmul.f32 2.0, %v759_v58  ;;  %v2508_v0 = vmul.f32 2.0, %v758_v59 }
 0x1bc   : > { %v413_v1 = vmax.f32 %v411_v53, %v412_v60  ;;  %v591_v2 = vmax.f32 %v589_v61, %v590_v62  ;;  %v757_v3 = vpop.xlane.xlu1 %756  ;;  %v754_v4 = vpop.xlane.xlu0 %753 }
 0x1bd   : > { %v767_v5 = vsel %vm402_vm1, %v2506_v63, -inf  ;;  %v766_v6 = vsel %vm402_vm1, %v2508_v0, -inf  ;;  %v761_v7 = vadd.f32 %v757_v3, %v2459_v21  ;;  %v760_v8 = vadd.f32 %v754_v4, %v2464_v22 }
 0x1be   : > { %v414_v10 = vrot.slane %v413_v1, 1  ;;  %v592_v11 = vrot.slane %v591_v2, 4  ;;  %v770_v18 = vmax.f32 %v766_v6, %v767_v5 }
 0x1bf   : > { %v2516_v12 = vmul.f32 2.0, %v761_v7  ;;  %v2518_v13 = vmul.f32 2.0, %v760_v8 }
 0x1c0   : > { %v415_v16 = vmax.f32 %v413_v1, %v414_v10  ;;  %v593_v17 = vmax.f32 %v591_v2, %v592_v11  ;;  %v932_v20 = vpop.xlane.xlu1 %931  ;;  %v929_v25 = vpop.xlane.xlu0 %928 }
 0x1c1   : > { %v769_v26 = vsel %vm402_vm1, %v2516_v12, -inf  ;;  %v768_v27 = vsel %vm402_vm1, %v2518_v13, -inf  ;;  %v940_v28 = vadd.f32 %v932_v20, %v2447_v14  ;;  %v939_v29 = vadd.f32 %v929_v25, %v2452_v15 }
 0x1c2   : > { %v416_v30 = vsub.f32 %v2468_v24, %v415_v16  ;;  %v418_v33 = vsub.f32 %v2478_v32, %v415_v16  ;;  %v419_v34 = vsub.f32 %v2476_v31, %v415_v16  ;;  %v594_v35 = vrot.slane %v593_v17, 2 }
 0x1c3   : > { %v771_v36 = vmax.f32 %v768_v27, %v769_v26  ;;  %v2529_v37 = vmul.f32 2.0, %v940_v28  ;;  %v2531_v38 = vmul.f32 2.0, %v939_v29  ;;  %v417_v39 = vsub.f32 %v2466_v23, %v415_v16 }
 0x1c4   : > { %v420_v40 = vmul.f32 1.442695, %v416_v30  ;;  %v424_v43 = vmul.f32 1.442695, %v418_v33  ;;  %v595_v44 = vmax.f32 %v593_v17, %v594_v35  ;;  %v938_v14 = vpop.xlane.xlu1 %937  ;;  %v935_v45 = vpop.xlane.xlu0 %934  ;;  %v426_v48 = vmul.f32 1.442695, %v419_v34 }
 0x1c5   : > { %v772_v15 = vmax.f32 %v770_v18, %v771_v36  ;;  %v948_v24 = vsel %vm402_vm1, %v2529_v37, -inf  ;;  %v942_v32 = vadd.f32 %v938_v14, %v2459_v21  ;;  %v947_v46 = vsel %vm402_vm1, %v2531_v38, -inf }
 0x1c6   : > { %1922 = vpow2.f32 %v420_v40  ;;  %v596_v31 = vrot.slane %v595_v44, 1  ;;  %v941_v47 = vadd.f32 %v935_v45, %v2464_v22  ;;  %v422_v50 = vmul.f32 1.442695, %v417_v39 }
 0x1c7   : > { %v773_v23 = vrot.slane %v772_v15, 4  ;;  %v2540_v49 = vmul.f32 2.0, %v942_v32  ;;  %1924 = vpow2.f32 %v424_v43  ;;  %v951_v56 = vmax.f32 %v947_v46, %v948_v24 }
 0x1c8   : > { %v597_v53 = vmax.f32 %v595_v44, %v596_v31  ;;  %v2542_v54 = vmul.f32 2.0, %v941_v47  ;;  %1926 = vpow2.f32 %v422_v50 }
 0x1c9   : > { %v774_v55 = vmax.f32 %v772_v15, %v773_v23  ;;  %v950_v21 = vsel %vm402_vm1, %v2540_v49, -inf  ;;  %1928 = vpow2.f32 %v426_v48 }
 0x1ca   : > { %v598_v57 = vsub.f32 %v2488_v42, %v597_v53  ;;  %v599_v58 = vsub.f32 %v2486_v41, %v597_v53  ;;  %v600_v22 = vsub.f32 %v2498_v52, %v597_v53  ;;  %v949_v59 = vsel %vm402_vm1, %v2542_v54, -inf }
 0x1cb   : > { %v775_v60 = vrot.slane %v774_v55, 2  ;;  %v952_v61 = vmax.f32 %v949_v59, %v950_v21  ;;  %v601_v62 = vsub.f32 %v2496_v51, %v597_v53 }
 0x1cc   : > { %v602_v1 = vmul.f32 1.442695, %v598_v57  ;;  %v604_v2 = vmul.f32 1.442695, %v599_v58  ;;  %v606_v3 = vmul.f32 1.442695, %v600_v22 }
 0x1cd   : > { %v776_v4 = vmax.f32 %v774_v55, %v775_v60  ;;  %v953_v5 = vmax.f32 %v951_v56, %v952_v61  ;;  %v608_v6 = vmul.f32 1.442695, %v601_v62 }
 0x1ce   : > { %1930 = vpow2.f32 %v602_v1 }
 0x1cf   : > { %1932 = vpow2.f32 %v604_v2  ;;  %v777_v42 = vrot.slane %v776_v4, 1  ;;  %v954_v41 = vrot.slane %v953_v5, 4 }
 0x1d0   : > { %v2552_v7 = vpop.eup %1922  ;;  %1934 = vpow2.f32 %v606_v3 }
 0x1d1   : > { %v778_v52 = vmax.f32 %v776_v4, %v777_v42  ;;  %v955_v8 = vmax.f32 %v953_v5, %v954_v41  ;;  %1936 = vpow2.f32 %v608_v6  ;;  %v2554_v10 = vpop.eup %1924  ;;  %v428_v51 = vsel %vm402_vm1, %v2552_v7, 0.0 }
 0x1d2   : > { %v2558_v11 = vpop.eup %1926  ;;  %v431_v33 = vsel %vm402_vm1, %v2554_v10, 0.0 }
 0x1d3   : > { %v780_v16 = vsub.f32 %v2506_v63, %v778_v52  ;;  %v781_v17 = vsub.f32 %v2518_v13, %v778_v52  ;;  %v782_v18 = vsub.f32 %v2516_v12, %v778_v52  ;;  %v956_v20 = vrot.slane %v955_v8, 2  ;;  %v2566_v27 = vpop.eup %1928 }
 0x1d4   : > { %v429_v25 = vsel %vm402_vm1, %v2558_v11, 0.0  ;;  %v779_v26 = vsub.f32 %v2508_v0, %v778_v52  ;;  %v433_v12 = vsel %vm402_vm1, %v2566_v27, 0.0 }
 0x1d5   : > { %v785_v28 = vmul.f32 1.442695, %v780_v16  ;;  %v787_v29 = vmul.f32 1.442695, %v781_v17  ;;  %v430_v30 = vadd.f32 %v429_v25, %v428_v51  ;;  %v957_v34 = vmax.f32 %v955_v8, %v956_v20 }
 0x1d6   : > { %v783_v63 = vmul.f32 1.442695, %v779_v26  ;;  %v789_v36 = vmul.f32 1.442695, %v782_v18 }
 0x1d7   : > { %1938 = vpow2.f32 %v785_v28  ;;  %v432_v13 = vadd.f32 %v431_v33, %v430_v30  ;;  %v958_v39 = vrot.slane %v957_v34, 1 }
 0x1d8   : > { %v2570_v35 = vpop.eup %1930  ;;  %1940 = vpow2.f32 %v787_v29 }
 0x1d9   : > { %v2574_v0 = vpop.eup %1932  ;;  %v610_v40 = vsel %vm402_vm1, %v2570_v35, 0.0  ;;  %v434_v43 = vadd.f32 %v433_v12, %v432_v13  ;;  %v959_v45 = vmax.f32 %v957_v34, %v958_v39  ;;  %1942 = vpow2.f32 %v783_v63 }
 0x1da   : > { %v2578_v44 = vpop.eup %1934  ;;  %v611_v14 = vsel %vm402_vm1, %v2574_v0, 0.0  ;;  %1944 = vpow2.f32 %v789_v36 }
 0x1db   : > { %v2582_v15 = vpop.eup %1936  ;;  %v612_v24 = vadd.f32 %v611_v14, %v610_v40  ;;  %v435_v32 = vrot.slane %v434_v43, 4  ;;  %v613_v31 = vsel %vm402_vm1, %v2578_v44, 0.0  ;;  %v960_v46 = vsub.f32 %v2531_v38, %v959_v45 }
 0x1dc   : > { %v962_v47 = vsub.f32 %v2542_v54, %v959_v45  ;;  %v963_v23 = vsub.f32 %v2540_v49, %v959_v45  ;;  %v961_v53 = vsub.f32 %v2529_v37, %v959_v45  ;;  %v615_v21 = vsel %vm402_vm1, %v2582_v15, 0.0 }
 0x1dd   : > { %v614_v48 = vadd.f32 %v613_v31, %v612_v24  ;;  %v436_v50 = vadd.f32 %v435_v32, %v434_v43  ;;  %v964_v55 = vmul.f32 1.442695, %v960_v46  ;;  %v1072_v24 = vld [vmem:[#allocation6 + $0x8] sm:$0xff]  ;;  %v1074_v32 = vld [vmem:[#allocation6 + $0x18] sm:$0xff] }
 0x1de   : > { %v968_v56 = vmul.f32 1.442695, %v962_v47  ;;  %v966_v22 = vmul.f32 1.442695, %v961_v53  ;;  %v970_v38 = vmul.f32 1.442695, %v963_v23  ;;  %v1726_v46 = vpack.c.bf16 %v1074_v32, %v1072_v24 }
 0x1df   : > { %v437_v57 = vrot.slane %v436_v50, 2  ;;  %v616_v58 = vadd.f32 %v615_v21, %v614_v48  ;;  %1946 = vpow2.f32 %v964_v55  ;;  %v1071_v47 = vld [vmem:[#allocation6] sm:$0xff]  ;;  %v1073_v48 = vld [vmem:[#allocation6 + $0x10] sm:$0xff]  ;;  %v1136_v53 = vld [vmem:[#allocation6 + $0x208] sm:$0xff] }
 0x1e0   : > { %1948 = vpow2.f32 %v968_v56  ;;  %v1138_v55 = vld [vmem:[#allocation6 + $0x218] sm:$0xff]  ;;  %1727 = vmatprep.subr.bf16.mxu1 %v1726_v46  ;;  %v1135_v21 = vld [vmem:[#allocation6 + $0x200] sm:$0xff]  ;;  %v1148_v46 = vld [vmem:[#allocation6 + $0x268] sm:$0xff] }
 0x1e1   : > { %v2592_v59 = vpop.eup %1938  ;;  %v438_v60 = vadd.f32 %v437_v57, %v436_v50  ;;  %v617_v54 = vrot.slane %v616_v58, 4  ;;  %1950 = vpow2.f32 %v966_v22  ;;  %v1728_v50 = vpack.c.bf16 %v1073_v48, %v1071_v47  ;;  %v1137_v57 = vld [vmem:[#allocation6 + $0x210] sm:$0xff]  ;;  %v1086_v24 = vld [vmem:[#allocation6 + $0x78] sm:$0xff]  ;;  %v1083_v32 = vld [vmem:[#allocation6 + $0x60] sm:$0xff] }
 0x1e2   : > { %v2594_v61 = vpop.eup %1940  ;;  %v792_v37 = vsel %vm402_vm1, %v2592_v59, 0.0  ;;  %1952 = vpow2.f32 %v970_v38  ;;  %v1792_v38 = vpack.c.bf16 %v1137_v57, %v1135_v21  ;;  %v1150_v48 = vld [vmem:[#allocation6 + $0x278] sm:$0xff]  ;;  %v1088_v21 = vld [vmem:[#allocation6 + $0x88] sm:$0xff] }
 0x1e3   : > { %v439_v49 = vrot.slane %v438_v60, 1  ;;  %v618_v62 = vadd.f32 %v617_v54, %v616_v58  ;;  %v2598_v1 = vpop.eup %1942  ;;  %v794_v42 = vsel %vm402_vm1, %v2594_v61, 0.0  ;;  %1729 = vmatpush1.bf16.msra.mxu1 %v1728_v50  ;;  %v1075_v54 = vld [vmem:[#allocation6 + $0x20] sm:$0xff]  ;;  %v1149_v50 = vld [vmem:[#allocation6 + $0x270] sm:$0xff]  ;;  %v1090_v57 = vld [vmem:[#allocation6 + $0x98] sm:$0xff] }
 0x1e4   : > { %v791_v4 = vsel %vm402_vm1, %v2598_v1, 0.0  ;;  %v2602_v5 = vpop.eup %1944 }
 0x1e5   : > { %v440_v2 = vadd.f32 %v439_v49, %v438_v60  ;;  %v619_v3 = vrot.slane %v618_v62, 2  ;;  %v793_v6 = vadd.f32 %v792_v37, %v791_v4  ;;  %v796_v8 = vsel %vm402_vm1, %v2602_v5, 0.0  ;;  %v1078_v60 = vld [vmem:[#allocation6 + $0x38] sm:$0xff]  ;;  %v1077_v49 = vld [vmem:[#allocation6 + $0x30] sm:$0xff]  ;;  %v1139_v4 = vld [vmem:[#allocation6 + $0x220] sm:$0xff] }
 0x1e7   : > { %1954 = vrcp.f32 %v440_v2  ;;  %v620_v41 = vadd.f32 %v619_v3, %v618_v62  ;;  %v795_v52 = vadd.f32 %v794_v42, %v793_v6  ;;  %v1140_v2 = vld [vmem:[#allocation6 + $0x228] sm:$0xff]  ;;  %v1142_v3 = vld [vmem:[#allocation6 + $0x238] sm:$0xff] }
 0x1e9   : > { %v621_v51 = vrot.slane %v620_v41, 1  ;;  %v2608_v16 = vpop.eup %1946  ;;  %v797_v17 = vadd.f32 %v796_v8, %v795_v52  ;;  %v1141_v52 = vld [vmem:[#allocation6 + $0x230] sm:$0xff]  ;;  %v1794_v8 = vpack.c.bf16 %v1142_v3, %v1140_v2 }
 0x1ea   : > { %v2610_v20 = vpop.eup %1948  ;;  %v972_v26 = vsel %vm402_vm1, %v2608_v16, 0.0  ;;  %v1153_v2 = vld [vmem:[#allocation6 + $0x290] sm:$0xff] }
 0x1eb   : > { %v622_v18 = vadd.f32 %v621_v51, %v620_v41  ;;  %v798_v25 = vrot.slane %v797_v17, 4  ;;  %v2614_v28 = vpop.eup %1950  ;;  %v975_v63 = vsel %vm402_vm1, %v2610_v20, 0.0  ;;  %v1732_v41 = vpack.c.bf16 %v1077_v49, %v1075_v54  ;;  %v1152_v54 = vld [vmem:[#allocation6 + $0x288] sm:$0xff]  ;;  %v1154_v49 = vld [vmem:[#allocation6 + $0x298] sm:$0xff] }
 0x1ec   : > { %v973_v30 = vsel %vm402_vm1, %v2614_v28, 0.0  ;;  %v2618_v33 = vpop.eup %1952  ;;  %v1796_v51 = vpack.c.bf16 %v1141_v52, %v1139_v4  ;;  %v1092_v4 = vld [vmem:[#allocation6 + $0xa8] sm:$0xff]  ;;  %v1093_v52 = vld [vmem:[#allocation6 + $0xb0] sm:$0xff] }
 0x1ed   : > { %1956 = vrcp.f32 %v622_v18  ;;  %v799_v29 = vadd.f32 %v798_v25, %v797_v17  ;;  %v974_v34 = vadd.f32 %v973_v30, %v972_v26  ;;  %v977_v39 = vsel %vm402_vm1, %v2618_v33, 0.0  ;;  %v1082_v18 = vld [vmem:[#allocation6 + $0x58] sm:$0xff]  ;;  %v1079_v25 = vld [vmem:[#allocation6 + $0x40] sm:$0xff]  ;;  %v1144_v30 = vld [vmem:[#allocation6 + $0x248] sm:$0xff] }
 0x1ef   : > { %v800_v13 = vrot.slane %v799_v29, 2  ;;  %v976_v36 = vadd.f32 %v975_v63, %v974_v34  ;;  %v1146_v34 = vld [vmem:[#allocation6 + $0x258] sm:$0xff] }
 0x1f1   : > { %v2622_v12 = vpop.eup %1954  ;;  %v801_v14 = vadd.f32 %v800_v13, %v799_v29  ;;  %v978_v45 = vadd.f32 %v977_v39, %v976_v36  ;;  %v1081_v29 = vld [vmem:[#allocation6 + $0x50] sm:$0xff]  ;;  %v1798_v36 = vpack.c.bf16 %v1146_v34, %v1144_v30  ;;  %v1143_v39 = vld [vmem:[#allocation6 + $0x240] sm:$0xff]  ;;  %v1098_v30 = vld [vmem:[#allocation6 + $0xd8] sm:$0xff] }
 0x1f2   : > { %v443_v40 = vmul.f32 %v2622_v12, %v2558_v11  ;;  %v442_v43 = vmul.f32 %v2622_v12, %v2552_v7  ;;  %v1790_v11 = vpack.c.bf16 %v1138_v55, %v1136_v53  ;;  %v1076_v7 = vld [vmem:[#allocation6 + $0x28] sm:$0xff]  ;;  %v1736_v13 = vpack.c.bf16 %v1081_v29, %v1079_v25  ;;  %v1157_v25 = vld [vmem:[#allocation6 + $0x2b0] sm:$0xff] }
 0x1f3   : > { %v802_v31 = vrot.slane %v801_v14, 1  ;;  %v979_v23 = vrot.slane %v978_v45, 4  ;;  %v1730_v42 = vpack.c.bf16 %v1078_v60, %v1076_v7  ;;  %v1802_v55 = vpack.c.bf16 %v1150_v48, %v1148_v46  ;;  %v1096_v29 = vld [vmem:[#allocation6 + $0xc8] sm:$0xff]  ;;  %v1101_v48 = vld [vmem:[#allocation6 + $0xf0] sm:$0xff] }
 0x1f4   : > { %453 = vperm.xlu1 %1921, %v443_v40   ;;  %448 = vperm.xlu0 %1920, %v442_v43   ;;  %v1145_v40 = vld [vmem:[#allocation6 + $0x250] sm:$0xff]  ;;  %v1742_v7 = vpack.c.bf16 %v1090_v57, %v1088_v21 }
 0x1f5   : > { %v803_v56 = vadd.f32 %v802_v31, %v801_v14  ;;  %v980_v22 = vadd.f32 %v979_v23, %v978_v45  ;;  %1791 = vmatprep.subr.bf16.mxu0 %v1790_v11  ;;  %1731 = vmatprep.subr.bf16.mxu1 %v1730_v42  ;;  %v1800_v43 = vpack.c.bf16 %v1145_v40, %v1143_v39  ;;  %v1084_v45 = vld [vmem:[#allocation6 + $0x68] sm:$0xff]  ;;  %v1085_v31 = vld [vmem:[#allocation6 + $0x70] sm:$0xff]  ;;  %v1147_v23 = vld [vmem:[#allocation6 + $0x260] sm:$0xff] }
 0x1f6   : > { %1793 = vmatpush1.bf16.msra.mxu0 %v1792_v38  ;;  %1733 = vmatpush1.bf16.msra.mxu1 %v1732_v41  ;;  %v1740_v47 = vpack.c.bf16 %v1085_v31, %v1083_v32  ;;  %v1089_v38 = vld [vmem:[#allocation6 + $0x90] sm:$0xff]  ;;  %v1091_v41 = vld [vmem:[#allocation6 + $0xa0] sm:$0xff]  ;;  %v1160_v40 = vld [vmem:[#allocation6 + $0x2c8] sm:$0xff] }
 0x1f7   : > { %v2630_v58 = vpop.eup %1956  ;;  %1958 = vrcp.f32 %v803_v56  ;;  %v981_v6 = vrot.slane %v980_v22, 2  ;;  %1795 = vmatprep.subr.bf16.mxu0 %v1794_v8  ;;  %v1804_v56 = vpack.c.bf16 %v1149_v50, %v1147_v23  ;;  %v1748_v8 = vpack.c.bf16 %v1093_v52, %v1091_v41  ;;  %v1102_v32 = vld [vmem:[#allocation6 + $0xf8] sm:$0xff]  ;;  %v1164_v50 = vld [vmem:[#allocation6 + $0x2e8] sm:$0xff] }
 0x1f8   : > { %v627_v62 = vmul.f32 %v2630_v58, %v2582_v15  ;;  %v624_v37 = vmul.f32 %v2630_v58, %v2570_v35  ;;  %v1080_v15 = vld [vmem:[#allocation6 + $0x48] sm:$0xff]  ;;  %v625_v35 = vmul.f32 %v2630_v58, %v2574_v0  ;;  %v1738_v0 = vpack.c.bf16 %v1086_v24, %v1084_v45  ;;  %v1161_v45 = vld [vmem:[#allocation6 + $0x2d0] sm:$0xff]  ;;  %v1174_v52 = vld [vmem:[#allocation6 + $0x338] sm:$0xff] }
 0x1f9   : > { %v982_v17 = vadd.f32 %v981_v6, %v980_v22  ;;  %v1734_v26 = vpack.c.bf16 %v1082_v18, %v1080_v15  ;;  %v1087_v22 = vld [vmem:[#allocation6 + $0x80] sm:$0xff]  ;;  %v1094_v6 = vld [vmem:[#allocation6 + $0xb8] sm:$0xff]  ;;  %v1172_v41 = vld [vmem:[#allocation6 + $0x328] sm:$0xff] }
 0x1fa   : > { %645 = vperm.xlu0 %1920, %v627_v62   ;;  %630 = vperm.xlu1 %1921, %v624_v37   ;;  %v1744_v60 = vpack.c.bf16 %v1089_v38, %v1087_v22  ;;  %v1151_v62 = vld [vmem:[#allocation6 + $0x280] sm:$0xff]  ;;  %v1806_v37 = vpack.c.bf16 %v1154_v49, %v1152_v54  ;;  %v1746_v42 = vpack.c.bf16 %v1094_v6, %v1092_v4  ;;  %v1104_v22 = vld [vmem:[#allocation6 + $0x108] sm:$0xff]  ;;  %v1106_v38 = vld [vmem:[#allocation6 + $0x118] sm:$0xff] }
 0x1fb   : > { %v983_v63 = vrot.slane %v982_v17, 1  ;;  %1797 = vmatpush1.bf16.msra.mxu0 %v1796_v51  ;;  %1735 = vmatprep.subr.bf16.mxu1 %v1734_v26  ;;  %v1156_v51 = vld [vmem:[#allocation6 + $0x2a8] sm:$0xff]  ;;  %v1155_v18 = vld [vmem:[#allocation6 + $0x2a0] sm:$0xff]  ;;  %v1109_v4 = vld [vmem:[#allocation6 + $0x130] sm:$0xff] }
 0x1fc   : > { %1799 = vmatprep.subr.bf16.mxu0 %v1798_v36  ;;  %1737 = vmatpush1.bf16.msra.mxu1 %v1736_v13  ;;  %v1812_v26 = vpack.c.bf16 %v1157_v25, %v1155_v18  ;;  %v1097_v13 = vld [vmem:[#allocation6 + $0xd0] sm:$0xff]  ;;  %v1750_v36 = vpack.c.bf16 %v1098_v30, %v1096_v29  ;;  %v1168_v49 = vld [vmem:[#allocation6 + $0x308] sm:$0xff]  ;;  %v1114_v18 = vld [vmem:[#allocation6 + $0x158] sm:$0xff] }
 0x1fd   : > { %v984_v14 = vadd.f32 %v983_v63, %v982_v17  ;;  %1739 = vmatprep.subr.bf16.mxu1 %v1738_v0  ;;  %v1158_v17 = vld [vmem:[#allocation6 + $0x2b8] sm:$0xff]  ;;  %v1095_v63 = vld [vmem:[#allocation6 + $0xc0] sm:$0xff]  ;;  %v1176_v29 = vld [vmem:[#allocation6 + $0x348] sm:$0xff] }
 0x1fe   : > { %635 = vperm.xlu1 %1921, %v625_v35   ;;  %v1810_v15 = vpack.c.bf16 %v1158_v17, %v1156_v51  ;;  %v1752_v39 = vpack.c.bf16 %v1097_v13, %v1095_v63  ;;  %v1826_v51 = vpack.c.bf16 %v1174_v52, %v1172_v41  ;;  %v1178_v30 = vld [vmem:[#allocation6 + $0x358] sm:$0xff]  ;;  %v1175_v63 = vld [vmem:[#allocation6 + $0x340] sm:$0xff]  ;;  %v1177_v13 = vld [vmem:[#allocation6 + $0x350] sm:$0xff] }
 0x1ff   : > { %1960 = vrcp.f32 %v984_v14  ;;  %1801 = vmatpush1.bf16.msra.mxu0 %v1800_v43  ;;  %v1162_v43 = vld [vmem:[#allocation6 + $0x2d8] sm:$0xff]  ;;  %v1159_v14 = vld [vmem:[#allocation6 + $0x2c0] sm:$0xff]  ;;  %v1193_v41 = vld [vmem:[#allocation6 + $0x3d0] sm:$0xff] }
 0x200   : > { %1741 = vmatpush1.bf16.msra.mxu1 %v1740_v47  ;;  %1803 = vmatprep.subr.bf16.mxu0 %v1802_v55  ;;  %v1814_v24 = vpack.c.bf16 %v1162_v43, %v1160_v40  ;;  %v1816_v0 = vpack.c.bf16 %v1161_v45, %v1159_v14  ;;  %v1099_v47 = vld [vmem:[#allocation6 + $0xe0] sm:$0xff]  ;;  %v1166_v55 = vld [vmem:[#allocation6 + $0x2f8] sm:$0xff]  ;;  %v1117_v45 = vld [vmem:[#allocation6 + $0x170] sm:$0xff] }
 0x201   : > { %v2638_v53 = vpop.eup %1958  ;;  %1743 = vmatprep.subr.bf16.mxu1 %v1742_v7  ;;  %v1756_v23 = vpack.c.bf16 %v1101_v48, %v1099_v47  ;;  %v1118_v40 = vld [vmem:[#allocation6 + $0x178] sm:$0xff]  ;;  %v1115_v14 = vld [vmem:[#allocation6 + $0x160] sm:$0xff]  ;;  %v1120_v47 = vld [vmem:[#allocation6 + $0x188] sm:$0xff] }
 0x202   : > { %v805_v11 = vmul.f32 %v2638_v53, %v2598_v1  ;;  %v806_v3 = vmul.f32 %v2638_v53, %v2592_v59  ;;  %v1808_v1 = vpack.c.bf16 %v1153_v2, %v1151_v62  ;;  %v444_v59 = vmul.f32 %v2622_v12, %v2554_v10  ;;  %v1167_v2 = vld [vmem:[#allocation6 + $0x300] sm:$0xff]  ;;  %v1122_v48 = vld [vmem:[#allocation6 + $0x198] sm:$0xff] }
 0x203   : > { %1805 = vmatpush1.bf16.msra.mxu0 %v1804_v56  ;;  %v445_v10 = vmul.f32 %v2622_v12, %v2566_v27  ;;  %v808_v31 = vmul.f32 %v2638_v53, %v2602_v5  ;;  %v1163_v27 = vld [vmem:[#allocation6 + $0x2e0] sm:$0xff]  ;;  %v1165_v12 = vld [vmem:[#allocation6 + $0x2f0] sm:$0xff]  ;;  %v626_v56 = vmul.f32 %v2630_v58, %v2578_v44  ;;  %v807_v7 = vmul.f32 %v2638_v53, %v2594_v61  ;;  %v1110_v61 = vld [vmem:[#allocation6 + $0x138] sm:$0xff] }
 0x204   : > { %811 = vperm.xlu1 %1921, %v805_v11   ;;  %1745 = vmatpush1.bf16.msra.mxu1 %v1744_v60  ;;  %v1818_v11 = vpack.c.bf16 %v1166_v55, %v1164_v50  ;;  %v1820_v21 = vpack.c.bf16 %v1165_v12, %v1163_v27  ;;  %v1758_v44 = vpack.c.bf16 %v1106_v38, %v1104_v22  ;;  %v1103_v58 = vld [vmem:[#allocation6 + $0x100] sm:$0xff]  ;;  %v1105_v60 = vld [vmem:[#allocation6 + $0x110] sm:$0xff]  ;;  %v1184_v27 = vld [vmem:[#allocation6 + $0x388] sm:$0xff] }
 0x205   : > { %1807 = vmatprep.subr.bf16.mxu0 %v1806_v37  ;;  %1747 = vmatprep.subr.bf16.mxu1 %v1746_v42  ;;  %v1760_v54 = vpack.c.bf16 %v1105_v60, %v1103_v58  ;;  %v1107_v53 = vld [vmem:[#allocation6 + $0x120] sm:$0xff]  ;;  %v1774_v50 = vpack.c.bf16 %v1122_v48, %v1120_v47  ;;  %v1121_v55 = vld [vmem:[#allocation6 + $0x190] sm:$0xff]  ;;  %v1186_v12 = vld [vmem:[#allocation6 + $0x398] sm:$0xff] }
 0x206   : > { %v1764_v42 = vpack.c.bf16 %v1109_v4, %v1107_v53  ;;  %v1126_v22 = vld [vmem:[#allocation6 + $0x1b8] sm:$0xff]  ;;  %v1123_v38 = vld [vmem:[#allocation6 + $0x1a0] sm:$0xff]  ;;  %v1188_v60 = vld [vmem:[#allocation6 + $0x3a8] sm:$0xff] }
 0x207   : > { %1809 = vmatpush1.bf16.msra.mxu0 %v1808_v1  ;;  %v1108_v1 = vld [vmem:[#allocation6 + $0x128] sm:$0xff]  ;;  %v1129_v53 = vld [vmem:[#allocation6 + $0x1d0] sm:$0xff] }
 0x208   : > { %816 = vperm.xlu1 %1921, %v806_v3   ;;  %1749 = vmatpush1.bf16.msra.mxu1 %v1748_v8  ;;  %v1169_v3 = vld [vmem:[#allocation6 + $0x310] sm:$0xff]  ;;  %v1762_v6 = vpack.c.bf16 %v1110_v61, %v1108_v1  ;;  %v1171_v8 = vld [vmem:[#allocation6 + $0x320] sm:$0xff]  ;;  %v1192_v4 = vld [vmem:[#allocation6 + $0x3c8] sm:$0xff] }
 0x209   : > { %v1961_v35 = vpop.eup %1960  ;;  %1811 = vmatprep.subr.bf16.mxu0 %v1810_v15  ;;  %1751 = vmatprep.subr.bf16.mxu1 %v1750_v36  ;;  %v1112_v15 = vld [vmem:[#allocation6 + $0x148] sm:$0xff]  ;;  %v1832_v36 = vpack.c.bf16 %v1177_v13, %v1175_v63  ;;  %v1127_v61 = vld [vmem:[#allocation6 + $0x1c0] sm:$0xff] }
 0x20a   : > { %v987_v34 = vmul.f32 %v1961_v35, %v2614_v28  ;;  %v1100_v28 = vld [vmem:[#allocation6 + $0xe8] sm:$0xff]  ;;  %v989_v5 = vmul.f32 %v1961_v35, %v2618_v33  ;;  %v986_v57 = vmul.f32 %v1961_v35, %v2608_v16  ;;  %v1170_v33 = vld [vmem:[#allocation6 + $0x318] sm:$0xff]  ;;  %v988_v62 = vmul.f32 %v1961_v35, %v2610_v20  ;;  %v1173_v20 = vld [vmem:[#allocation6 + $0x330] sm:$0xff] }
 0x20b   : > { %1813 = vmatpush1.bf16.msra.mxu0 %v1812_v26  ;;  %v1754_v46 = vpack.c.bf16 %v1102_v32, %v1100_v28  ;;  %v1822_v37 = vpack.c.bf16 %v1170_v33, %v1168_v49  ;;  %v1824_v16 = vpack.c.bf16 %v1169_v3, %v1167_v2  ;;  %v1828_v17 = vpack.c.bf16 %v1173_v20, %v1171_v8  ;;  %v1111_v35 = vld [vmem:[#allocation6 + $0x140] sm:$0xff]  ;;  %v1128_v2 = vld [vmem:[#allocation6 + $0x1c8] sm:$0xff]  ;;  %v1130_v3 = vld [vmem:[#allocation6 + $0x1d8] sm:$0xff] }
 0x20c   : > { %458 = vperm.xlu1 %1921, %v444_v59   ;;  %997 = vperm.xlu0 %1920, %v987_v34   ;;  %v1766_v25 = vpack.c.bf16 %v1114_v18, %v1112_v15  ;;  %v1113_v59 = vld [vmem:[#allocation6 + $0x150] sm:$0xff]  ;;  %v1830_v34 = vpack.c.bf16 %v1178_v30, %v1176_v29  ;;  %v1179_v32 = vld [vmem:[#allocation6 + $0x360] sm:$0xff]  ;;  %v1782_v1 = vpack.c.bf16 %v1130_v3, %v1128_v2  ;;  %v1132_v8 = vld [vmem:[#allocation6 + $0x1e8] sm:$0xff] }
 0x20d   : > { %1753 = vmatpush1.bf16.msra.mxu1 %v1752_v39  ;;  %1815 = vmatprep.subr.bf16.mxu0 %v1814_v24  ;;  %v1768_v26 = vpack.c.bf16 %v1113_v59, %v1111_v35  ;;  %v1116_v39 = vld [vmem:[#allocation6 + $0x168] sm:$0xff]  ;;  %v1182_v24 = vld [vmem:[#allocation6 + $0x378] sm:$0xff]  ;;  %v1187_v49 = vld [vmem:[#allocation6 + $0x3a0] sm:$0xff]  ;;  %v1784_v20 = vpack.c.bf16 %v1129_v53, %v1127_v61 }
 0x20e   : > { %1755 = vmatprep.subr.bf16.mxu1 %v1754_v46  ;;  %v1770_v43 = vpack.c.bf16 %v1118_v40, %v1116_v39  ;;  %v1198_v15 = vld [vmem:[#allocation6 + $0x3f8] sm:$0xff]  ;;  %v1131_v35 = vld [vmem:[#allocation6 + $0x1e0] sm:$0xff]  ;;  %v1133_v59 = vld [vmem:[#allocation6 + $0x1f0] sm:$0xff] }
 0x20f   : > { %1817 = vmatpush1.bf16.msra.mxu0 %v1816_v0  ;;  %v1772_v0 = vpack.c.bf16 %v1117_v45, %v1115_v14  ;;  %v1195_v29 = vld [vmem:[#allocation6 + $0x3e0] sm:$0xff]  ;;  %v1197_v30 = vld [vmem:[#allocation6 + $0x3f0] sm:$0xff] }
 0x210   : > { %463 = vperm.xlu1 %1921, %v445_v10   ;;  %826 = vperm.xlu0 %1920, %v808_v31   ;;  %v1180_v10 = vld [vmem:[#allocation6 + $0x368] sm:$0xff]  ;;  %v1181_v31 = vld [vmem:[#allocation6 + $0x370] sm:$0xff]  ;;  %v1852_v63 = vpack.c.bf16 %v1197_v30, %v1195_v29  ;;  %v1985_v30 = vld [vmem:[%s2334_s16 + $0x98] sm:$0xff] }
 0x211   : > { %1757 = vmatpush1.bf16.msra.mxu1 %v1756_v23  ;;  %1819 = vmatprep.subr.bf16.mxu0 %v1818_v11  ;;  %v1834_v28 = vpack.c.bf16 %v1182_v24, %v1180_v10  ;;  %v1836_v46 = vpack.c.bf16 %v1181_v31, %v1179_v32  ;;  %v1119_v23 = vld [vmem:[#allocation6 + $0x180] sm:$0xff]  ;;  %v1838_v11 = vpack.c.bf16 %v1186_v12, %v1184_v27  ;;  %v2667_v45 = vld [vmem:[%s2334_s16 + $0x10] sm:$0xff]  ;;  %v2673_v24 = vld [vmem:[%s2334_s16 + $0x18] sm:$0xff] }
 0x212   : > { %1759 = vmatprep.subr.bf16.mxu1 %v1758_v44  ;;  %v1125_v44 = vld [vmem:[#allocation6 + $0x1b0] sm:$0xff]  ;;  %3199 = vst [vmem:[#allocation12_spill] sm:$0xff] %v2667_v45  ;;  %3201 = vst [vmem:[#allocation14_spill] sm:$0xff] %v2673_v24  ;;  %v2685_v31 = vld [vmem:[%s2334_s16 + $0x8] sm:$0xff] }
 0x213   : > { %1821 = vmatpush1.bf16.msra.mxu0 %v1820_v21  ;;  %v1183_v21 = vld [vmem:[#allocation6 + $0x380] sm:$0xff]  ;;  %v1780_v33 = vpack.c.bf16 %v1125_v44, %v1123_v38  ;;  %3205 = vst [vmem:[#allocation18_spill] sm:$0xff] %v2685_v31  ;;  %v1979_v44 = vld [vmem:[%s2334_s16 + $0x58] sm:$0xff]  ;;  %v2731_v3 = vld [vmem:[%s2334_s16 + $0x70] sm:$0xff] }
 0x214   : > { %640 = vperm.xlu1 %1921, %v626_v56   ;;  %1007 = vperm.xlu0 %1920, %v989_v5   ;;  %v1776_v56 = vpack.c.bf16 %v1121_v55, %v1119_v23  ;;  %v1185_v5 = vld [vmem:[#allocation6 + $0x390] sm:$0xff]  ;;  %v2691_v23 = vld [vmem:[%s2334_s16 + $0x20] sm:$0xff]  ;;  %v2697_v55 = vld [vmem:[%s2334_s16 + $0x28] sm:$0xff]  ;;  %3215 = vst [vmem:[#allocation28_spill] sm:$0xff] %v2731_v3 }
 0x215   : > { %1761 = vmatpush1.bf16.msra.mxu1 %v1760_v54  ;;  %1823 = vmatprep.subr.bf16.mxu0 %v1822_v37  ;;  %v1190_v54 = vld [vmem:[#allocation6 + $0x3b8] sm:$0xff]  ;;  %v1189_v37 = vld [vmem:[#allocation6 + $0x3b0] sm:$0xff]  ;;  %3207 = vst [vmem:[#allocation20_spill] sm:$0xff] %v2691_v23  ;;  %3209 = vst [vmem:[#allocation22_spill] sm:$0xff] %v2697_v55 }
 0x216   : > { %1763 = vmatprep.subr.bf16.mxu1 %v1762_v6  ;;  %v1194_v6 = vld [vmem:[#allocation6 + $0x3d8] sm:$0xff] }
 0x217   : > { %1825 = vmatpush1.bf16.msra.mxu0 %v1824_v16  ;;  %v1844_v16 = vpack.c.bf16 %v1189_v37, %v1187_v49  ;;  %v1846_v52 = vpack.c.bf16 %v1194_v6, %v1192_v4  ;;  %v2725_v37 = vld [vmem:[%s2334_s16 + $0x38] sm:$0xff] }
 0x218   : > { %992 = vperm.xlu1 %1921, %v986_v57   ;;  %1827 = vmatprep.subr.bf16.mxu0 %v1826_v51  ;;  %v1124_v57 = vld [vmem:[#allocation6 + $0x1a8] sm:$0xff]  ;;  %v1134_v51 = vld [vmem:[#allocation6 + $0x1f8] sm:$0xff]  ;;  %3213 = vst [vmem:[#allocation26_spill] sm:$0xff] %v2725_v37 }
 0x219   : > { %1765 = vmatpush1.bf16.msra.mxu1 %v1764_v42  ;;  %v1778_v58 = vpack.c.bf16 %v1126_v22, %v1124_v57  ;;  %v1191_v42 = vld [vmem:[#allocation6 + $0x3c0] sm:$0xff]  ;;  %v1977_v57 = vld [vmem:[%s2334_s16 + $0x48] sm:$0xff]  ;;  %v1978_v22 = vld [vmem:[%s2334_s16 + $0x50] sm:$0xff] }
 0x21a   : > { %1767 = vmatprep.subr.bf16.mxu1 %v1766_v25  ;;  %v1848_v18 = vpack.c.bf16 %v1193_v41, %v1191_v42  ;;  %v1786_v25 = vpack.c.bf16 %v1134_v51, %v1132_v8 }
 0x21b   : > { %1829 = vmatpush1.bf16.msra.mxu0 %v1828_v17  ;;  %v1196_v17 = vld [vmem:[#allocation6 + $0x3e8] sm:$0xff] }
 0x21c   : > { %821 = vperm.xlu1 %1921, %v807_v7   ;;  %1831 = vmatprep.subr.bf16.mxu0 %v1830_v34  ;;  %v1840_v7 = vpack.c.bf16 %v1185_v5, %v1183_v21  ;;  %v1788_v34 = vpack.c.bf16 %v1133_v59, %v1131_v35  ;;  %v1976_v21 = vld [vmem:[%s2334_s16 + $0x40] sm:$0xff] }
 0x21d   : > { %1769 = vmatpush1.bf16.msra.mxu1 %v1768_v26  ;;  %v1850_v26 = vpack.c.bf16 %v1198_v15, %v1196_v17 }
 0x21e   : > { %1771 = vmatprep.subr.bf16.mxu1 %v1770_v43 }
 0x21f   : > { %1833 = vmatpush1.bf16.msra.mxu0 %v1832_v36 }
 0x220   : > { %1002 = vperm.xlu1 %1921, %v988_v62   ;;  %1835 = vmatprep.subr.bf16.mxu0 %v1834_v28  ;;  %v1842_v62 = vpack.c.bf16 %v1190_v54, %v1188_v60  ;;  %v2679_v28 = vld [vmem:[%s2334_s16] sm:$0xff] }
 0x221   : > { %1773 = vmatpush1.bf16.msra.mxu1 %v1772_v0  ;;  %3203 = vst [vmem:[#allocation16_spill] sm:$0xff] %v2679_v28 }
 0x222   : > { %1775 = vmatprep.subr.bf16.mxu1 %v1774_v50 }
 0x223   : > { %1837 = vmatpush1.bf16.msra.mxu0 %v1836_v46 }
 0x224   : > { %1839 = vmatprep.subr.bf16.mxu0 %v1838_v11 }
 0x225   : > { %1777 = vmatpush1.bf16.msra.mxu1 %v1776_v56 }
 0x226   : > { %1779 = vmatprep.subr.bf16.mxu1 %v1778_v58 }
 0x227   : > { %1841 = vmatpush1.bf16.msra.mxu0 %v1840_v7 }
 0x228   : > { %1843 = vmatprep.subr.bf16.mxu0 %v1842_v62 }
 0x229   : > { %1781 = vmatpush1.bf16.msra.mxu1 %v1780_v33  ;;  %v2719_v33 = vld [vmem:[%s2334_s16 + $0x30] sm:$0xff] }
 0x22a   : > { %1783 = vmatprep.subr.bf16.mxu1 %v1782_v1  ;;  %3211 = vst [vmem:[#allocation24_spill] sm:$0xff] %v2719_v33  ;;  %v2737_v1 = vld [vmem:[%s2334_s16 + $0x78] sm:$0xff] }
 0x22b   : > { %1845 = vmatpush1.bf16.msra.mxu0 %v1844_v16  ;;  %3217 = vst [vmem:[#allocation30_spill] sm:$0xff] %v2737_v1 }
 0x22c   : > { %1847 = vmatprep.subr.bf16.mxu0 %v1846_v52 }
 0x22d   : > { %1785 = vmatpush1.bf16.msra.mxu1 %v1784_v20 }
 0x22e   : > { %1787 = vmatprep.subr.bf16.mxu1 %v1786_v25 }
 0x22f   : > { %1849 = vmatpush1.bf16.msra.mxu0 %v1848_v18 }
 0x230   : > { %1851 = vmatprep.subr.bf16.mxu0 %v1850_v26  ;;  %v1984_v26 = vld [vmem:[%s2334_s16 + $0x90] sm:$0xff] }
 0x231   : > { %1789 = vmatpush1.bf16.msra.mxu1 %v1788_v34 }
 0x233   : > { %1853 = vmatpush1.bf16.msra.mxu0 %v1852_v63  ;;  %v1986_v63 = vld [vmem:[%s2334_s16 + $0x60] sm:$0xff] }
 0x273   : > { %v454_v13 = vpop.permute.xlu1 %453  ;;  %v449_v43 = vpop.permute.xlu0 %448 }
 0x274   : > { %v2670_v10 = vmul.f32 %v2667_v45, %v454_v13  ;;  %v2676_v0 = vmul.f32 %v2673_v24, %v454_v13  ;;  %v2682_v32 = vmul.f32 %v2679_v28, %v449_v43  ;;  %v2688_v46 = vmul.f32 %v2685_v31, %v449_v43  ;;  %v1987_v43 = vld [vmem:[%s2334_s16 + $0x68] sm:$0xff] }
 0x276   : > { %3200 = vst [vmem:[#allocation13_spill] sm:$0xff] %v2670_v10  ;;  %3202 = vst [vmem:[#allocation15_spill] sm:$0xff] %v2676_v0  ;;  %v492_v12 = vadd.f32 %v2670_v10, %v2682_v32  ;;  %v501_v56 = vadd.f32 %v2676_v0, %v2688_v46 }
 0x277   : > { %3204 = vst [vmem:[#allocation17_spill] sm:$0xff] %v2682_v32  ;;  %3206 = vst [vmem:[#allocation19_spill] sm:$0xff] %v2688_v46 }
 0x279   : > { %v2658_v36 = vpop.permute.xlu1 %630  ;;  %v646_v47 = vpop.permute.xlu0 %645 }
 0x27a   : > { %v648_v5 = vmul.f32 %v1976_v21, %v2658_v36  ;;  %v649_v7 = vmul.f32 %v1977_v57, %v2658_v36  ;;  %v2734_v16 = vmul.f32 %v2731_v3, %v646_v47  ;;  %v2740_v61 = vmul.f32 %v2737_v1, %v646_v47  ;;  %v1996_v1 = vld [vmem:[%s2334_s16 + $0xc0] sm:$0xff] }
 0x27c   : > { %3216 = vst [vmem:[#allocation29_spill] sm:$0xff] %v2734_v16  ;;  %3218 = vst [vmem:[#allocation31_spill] sm:$0xff] %v2740_v61 }
 0x27d   : > { %v2660_v39 = vpop.permute.xlu1 %635 }
 0x27e   : > { %v650_v38 = vmul.f32 %v1978_v22, %v2660_v39  ;;  %v651_v58 = vmul.f32 %v1979_v44, %v2660_v39 }
 0x280   : > { %v657_v8 = vmax.f32 %v650_v38, %v2734_v16  ;;  %v666_v51 = vmax.f32 %v651_v58, %v2740_v61  ;;  %v674_v20 = vadd.f32 %v650_v38, %v648_v5  ;;  %v683_v15 = vadd.f32 %v651_v58, %v649_v7 }
 0x283   : > { %v2662_v40 = vpop.permute.xlu1 %811 }
 0x287   : > { %v2664_v14 = vpop.permute.xlu1 %816 }
 0x288   : > { %v2760_v29 = vmul.f32 %v1984_v26, %v2664_v14  ;;  %v2764_v34 = vmul.f32 %v1985_v30, %v2664_v14 }
 0x28b   : > { %v459_v48 = vpop.permute.xlu1 %458  ;;  %v2706_v11 = vpop.permute.xlu0 %997 }
 0x28c   : > { %v2694_v50 = vmul.f32 %v2691_v23, %v459_v48  ;;  %v2700_v27 = vmul.f32 %v2697_v55, %v459_v48 }
 0x28e   : > { %3208 = vst [vmem:[#allocation21_spill] sm:$0xff] %v2694_v50  ;;  %3210 = vst [vmem:[#allocation23_spill] sm:$0xff] %v2700_v27  ;;  %v493_v54 = vadd.f32 %v492_v12, %v2694_v50  ;;  %v502_v49 = vadd.f32 %v501_v56, %v2700_v27  ;;  %v474_v53 = vmax.f32 %v2682_v32, %v2694_v50 }
 0x28f   : > { %v464_v60 = vpop.permute.xlu1 %463  ;;  %v483_v4 = vmax.f32 %v2688_v46, %v2700_v27  ;;  %v2756_v59 = vpop.permute.xlu0 %826  ;;  %v2000_v27 = vld [vmem:[%s2334_s16 + $0xe0] sm:$0xff] }
 0x290   : > { %v2722_v62 = vmul.f32 %v2719_v33, %v464_v60  ;;  %v2728_v2 = vmul.f32 %v2725_v37, %v464_v60  ;;  %v1988_v60 = vld [vmem:[%s2334_s16 + $0x80] sm:$0xff]  ;;  %v1997_v37 = vld [vmem:[%s2334_s16 + $0xc8] sm:$0xff] }
 0x292   : > { %3212 = vst [vmem:[#allocation25_spill] sm:$0xff] %v2722_v62  ;;  %3214 = vst [vmem:[#allocation27_spill] sm:$0xff] %v2728_v2  ;;  %v475_v6 = vmax.f32 %v2670_v10, %v2722_v62  ;;  %v484_v42 = vmax.f32 %v2676_v0, %v2728_v2  ;;  %v494_v41 = vadd.f32 %v493_v54, %v2722_v62 }
 0x293   : > { %v503_v52 = vadd.f32 %v502_v49, %v2728_v2  ;;  %v2754_v17 = vpop.permute.xlu1 %640  ;;  %v2774_v54 = vmul.f32 %v1988_v60, %v2662_v40  ;;  %v1989_v49 = vld [vmem:[%s2334_s16 + $0x88] sm:$0xff]  ;;  %v1995_v60 = vld [vmem:[%s2334_s16 + $0xf8] sm:$0xff] }
 0x294   : > { %v476_v18 = vmax.f32 %v474_v53, %v475_v6  ;;  %v485_v25 = vmax.f32 %v483_v4, %v484_v42  ;;  %v495_v35 = vrot.slane %v494_v41, 4  ;;  %v652_v13 = vmul.f32 %v1986_v63, %v2754_v17  ;;  %v1990_v4 = vld [vmem:[%s2334_s16 + $0xb0] sm:$0xff]  ;;  %v1991_v42 = vld [vmem:[%s2334_s16 + $0xb8] sm:$0xff]  ;;  %v2791_v63 = vpop.permute.xlu0 %1007 }
 0x295   : > { %v653_v47 = vmul.f32 %v1987_v43, %v2754_v17  ;;  %v504_v21 = vrot.slane %v503_v52, 4  ;;  %v2778_v53 = vmul.f32 %v1989_v49, %v2662_v40  ;;  %v835_v6 = vmul.f32 %v1990_v4, %v2756_v59 }
 0x296   : > { %v477_v48 = vrot.slane %v476_v18, 4  ;;  %v486_v12 = vrot.slane %v485_v25, 4  ;;  %v496_v56 = vadd.f32 %v495_v35, %v494_v41  ;;  %v656_v57 = vmax.f32 %v648_v5, %v652_v13 }
 0x297   : > { %v665_v22 = vmax.f32 %v649_v7, %v653_v47  ;;  %v675_v38 = vadd.f32 %v674_v20, %v652_v13  ;;  %v684_v44 = vadd.f32 %v683_v15, %v653_v47  ;;  %v2770_v58 = vpop.permute.xlu1 %992  ;;  %v836_v5 = vmul.f32 %v1991_v42, %v2756_v59 }
 0x298   : > { %v658_v7 = vmax.f32 %v656_v57, %v657_v8  ;;  %v2785_v15 = vmax.f32 %v476_v18, %v477_v48  ;;  %v2787_v35 = vmax.f32 %v485_v25, %v486_v12  ;;  %v497_v26 = vrot.slane %v496_v56, 2  ;;  %v1992_v25 = vld [vmem:[%s2334_s16 + $0xd0] sm:$0xff] }
 0x299   : > { %v667_v41 = vmax.f32 %v665_v22, %v666_v51  ;;  %v676_v20 = vadd.f32 %v675_v38, %v2734_v16  ;;  %v2789_v30 = vadd.f32 %v504_v21, %v503_v52  ;;  %v855_v13 = vadd.f32 %v2760_v29, %v2774_v54  ;;  %v1993_v52 = vld [vmem:[%s2334_s16 + $0xd8] sm:$0xff]  ;;  %v1994_v38 = vld [vmem:[%s2334_s16 + $0xf0] sm:$0xff] }
 0x29a   : > { %v864_v8 = vadd.f32 %v2764_v34, %v2778_v53  ;;  %v659_v51 = vrot.slane %v658_v7, 4  ;;  %v2798_v43 = vadd.f32 %v684_v44, %v2740_v61  ;;  %v1012_v47 = vmul.f32 %v1992_v25, %v2706_v11  ;;  %v1999_v61 = vld [vmem:[%s2334_s16 + $0xa8] sm:$0xff] }
 0x29b   : > { %v2800_v18 = vpop.permute.xlu1 %821  ;;  %v1013_v48 = vmul.f32 %v1993_v52, %v2706_v11  ;;  %v668_v12 = vrot.slane %v667_v41, 4  ;;  %v677_v21 = vrot.slane %v676_v20, 4  ;;  %v838_v57 = vmax.f32 %v2760_v29, %v835_v6 }
 0x29c   : > { %v847_v22 = vmax.f32 %v2764_v34, %v836_v5  ;;  %v1016_v44 = vmul.f32 %v1994_v38, %v2791_v63  ;;  %v1017_v49 = vmul.f32 %v1995_v60, %v2791_v63  ;;  %v479_v4 = vrot.slane %v2785_v15, 2 }
 0x29d   : > { %v488_v42 = vrot.slane %v2787_v35, 2  ;;  %v2814_v25 = vadd.f32 %v497_v26, %v496_v56  ;;  %v506_v52 = vrot.slane %v2789_v30, 2  ;;  %v660_v29 = vmax.f32 %v658_v7, %v659_v51  ;;  %v1998_v56 = vld [vmem:[%s2334_s16 + $0xa0] sm:$0xff] }
 0x29e   : > { %v686_v34 = vrot.slane %v2798_v43, 4  ;;  %v1010_v38 = vmul.f32 %v1996_v1, %v2770_v58  ;;  %v1011_v60 = vmul.f32 %v1997_v37, %v2770_v58  ;;  %v669_v24 = vmax.f32 %v667_v41, %v668_v12  ;;  %v2001_v1 = vld [vmem:[%s2334_s16 + $0xe8] sm:$0xff] }
 0x29f   : > { %v2822_v55 = vpop.permute.xlu1 %1002  ;;  %v2824_v31 = vadd.f32 %v677_v21, %v676_v20  ;;  %v833_v26 = vmul.f32 %v1998_v56, %v2800_v18  ;;  %v834_v7 = vmul.f32 %v1999_v61, %v2800_v18  ;;  %v1019_v51 = vmax.f32 %v1012_v47, %v1016_v44 }
 0x2a0   : > { %v1028_v2 = vmax.f32 %v1013_v48, %v1017_v49  ;;  %v1014_v0 = vmul.f32 %v2000_v27, %v2822_v55  ;;  %v1015_v46 = vmul.f32 %v2001_v1, %v2822_v55  ;;  %v1036_v56 = vadd.f32 %v1012_v47, %v1010_v38 }
 0x2a1   : > { %v837_v37 = vmax.f32 %v2774_v54, %v833_v26  ;;  %v846_v41 = vmax.f32 %v2778_v53, %v834_v7  ;;  %v856_v20 = vadd.f32 %v855_v13, %v833_v26  ;;  %v865_v12 = vadd.f32 %v864_v8, %v834_v7 }
 0x2a2   : > { %v1018_v21 = vmax.f32 %v1010_v38, %v1014_v0  ;;  %v1027_v3 = vmax.f32 %v1011_v60, %v1015_v46  ;;  %v1045_v33 = vadd.f32 %v1013_v48, %v1011_v60  ;;  %v1037_v62 = vadd.f32 %v1036_v56, %v1014_v0 }
 0x2a3   : > { %v839_v23 = vmax.f32 %v837_v37, %v838_v57  ;;  %v848_v61 = vmax.f32 %v846_v41, %v847_v22  ;;  %v857_v45 = vadd.f32 %v856_v20, %v835_v6  ;;  %v2836_v28 = vadd.f32 %v865_v12, %v836_v5 }
 0x2a4   : > { %v1020_v16 = vmax.f32 %v1018_v21, %v1019_v51  ;;  %v1029_v27 = vmax.f32 %v1027_v3, %v1028_v2  ;;  %v1046_v50 = vadd.f32 %v1045_v33, %v1015_v46  ;;  %v661_v1 = vrot.slane %v660_v29, 2 }
 0x2a5   : > { %v840_v10 = vrot.slane %v839_v23, 4  ;;  %v849_v54 = vrot.slane %v848_v61, 4  ;;  %v858_v32 = vrot.slane %v857_v45, 4  ;;  %v1038_v8 = vadd.f32 %v1037_v62, %v1016_v44 }
 0x2a6   : > { %v1021_v53 = vrot.slane %v1020_v16, 4  ;;  %v1030_v13 = vrot.slane %v1029_v27, 4  ;;  %v1047_v26 = vadd.f32 %v1046_v50, %v1017_v49  ;;  %v480_v47 = vmax.f32 %v2785_v15, %v479_v4 }
 0x2a7   : > { %v2840_v48 = vadd.f32 %v506_v52, %v2789_v30  ;;  %v687_v6 = vadd.f32 %v686_v34, %v2798_v43  ;;  %v841_v5 = vmax.f32 %v839_v23, %v840_v10  ;;  %v679_v0 = vrot.slane %v2824_v31, 2 }
 0x2a8   : > { %v867_v46 = vrot.slane %v2836_v28, 4  ;;  %v1022_v33 = vmax.f32 %v1020_v16, %v1021_v53  ;;  %v489_v2 = vmax.f32 %v2787_v35, %v488_v42  ;;  %v1039_v3 = vrot.slane %v1038_v8, 4 }
 0x2a9   : > { %v670_v62 = vrot.slane %v669_v24, 2  ;;  %v850_v50 = vmax.f32 %v848_v61, %v849_v54  ;;  %v1031_v57 = vmax.f32 %v1029_v27, %v1030_v13  ;;  %v859_v15 = vadd.f32 %v858_v32, %v857_v45 }
 0x2aa   : > { %v1048_v22 = vrot.slane %v1047_v26, 4  ;;  %v662_v30 = vmax.f32 %v660_v29, %v661_v1  ;;  %v842_v44 = vrot.slane %v841_v5, 2  ;;  %v481_v23 = vrot.slane %v480_v47, 1 }
 0x2ab   : > { %v671_v49 = vmax.f32 %v669_v24, %v670_v62  ;;  %v851_v43 = vrot.slane %v850_v50, 2  ;;  %v1032_v10 = vrot.slane %v1031_v57, 2  ;;  %v490_v4 = vrot.slane %v489_v2, 1 }
 0x2ac   : > { %v663_v52 = vrot.slane %v662_v30, 1  ;;  %v843_v34 = vmax.f32 %v841_v5, %v842_v44  ;;  %v1023_v16 = vrot.slane %v1022_v33, 2  ;;  %v1040_v38 = vadd.f32 %v1039_v3, %v1038_v8 }
 0x2ad   : > { %v672_v35 = vrot.slane %v671_v49, 1  ;;  %v852_v42 = vmax.f32 %v850_v50, %v851_v43  ;;  %v1033_v60 = vmax.f32 %v1031_v57, %v1032_v10  ;;  %v688_v41 = vrot.slane %v687_v6, 2 }
 0x2ae   : > { %v664_v7 = vmax.f32 %v662_v30, %v663_v52  ;;  %v844_v51 = vrot.slane %v843_v34, 1  ;;  %v1024_v37 = vmax.f32 %v1022_v33, %v1023_v16  ;;  %v482_v20 = vmax.f32 %v480_v47, %v481_v23 }
 0x2af   : > { %v673_v45 = vmax.f32 %v671_v49, %v672_v35  ;;  %v853_v32 = vrot.slane %v852_v42, 1  ;;  %v1034_v29 = vrot.slane %v1033_v60, 1  ;;  %v491_v24 = vmax.f32 %v489_v2, %v490_v4 }
 0x2b0   : > { %v845_v12 = vmax.f32 %v843_v34, %v844_v51  ;;  %v1025_v21 = vrot.slane %v1024_v37, 1  ;;  %v689_v56 = vadd.f32 %v688_v41, %v687_v6  ;;  %v1057_v1 = vsel %vm1056_vm2, %v482_v20, %v664_v7 }
 0x2b1   : > { %v854_v61 = vmax.f32 %v852_v42, %v853_v32  ;;  %v1035_v27 = vmax.f32 %v1033_v60, %v1034_v29  ;;  %v508_v54 = vrot.slane %v2840_v48, 1  ;;  %v1058_v53 = vsel %vm1056_vm2, %v491_v24, %v673_v45 }
 0x2b2   : > { %v1026_v13 = vmax.f32 %v1024_v37, %v1025_v21  ;;  %v690_v8 = vrot.slane %v689_v56, 1  ;;  %v868_v5 = vadd.f32 %v867_v46, %v2836_v28  ;;  %v1060_v47 = vsel %vm1059_vm3, %v1057_v1, %v845_v12 }
 0x2b3   : > { %v1061_v33 = vsel %vm1059_vm3, %v1058_v53, %v854_v61  ;;  %v1049_v2 = vadd.f32 %v1048_v22, %v1047_v26  ;;  %v680_v3 = vadd.f32 %v679_v0, %v2824_v31  ;;  %v499_v6 = vrot.slane %v2814_v25, 1 }
 0x2b4   : > { %v1064_v62 = vsel %vm1062_vm4, %v1061_v33, %v1035_v27  ;;  %v1063_v50 = vsel %vm1062_vm4, %v1060_v47, %v1026_v13  ;;  %v869_v57 = vrot.slane %v868_v5, 2  ;;  %v691_v30 = vadd.f32 %v690_v8, %v689_v56 }
 0x2b5   : > { %1265 = vmatprep.mubr.f32.mxu1 %v1064_v62  ;;  %v1050_v44 = vrot.slane %v1049_v2, 2  ;;  %v681_v49 = vrot.slane %v680_v3, 1  ;;  %v860_v43 = vrot.slane %v859_v15, 2  ;;  %v1041_v46 = vrot.slane %v1040_v38, 2 }
 0x2b6   : > { %1266 = vmatmul.mubr.f32.vlgmr.msra.gmra.mrb[0].mxu1 %v1063_v50  ;;  %v870_v28 = vadd.f32 %v869_v57, %v868_v5  ;;  %v509_v10 = vadd.f32 %v508_v54, %v2840_v48  ;;  %v500_v23 = vadd.f32 %v499_v6, %v2814_v25  ;;  %v693_v52 = vmul.f32 0.03125, %v691_v30  ;;  %v2865_v30 = vld [vmem:[%s2334_s16 + $0x40] sm:$0xff] }
 0x2b7   : > { %v1051_v26 = vadd.f32 %v1050_v44, %v1049_v2  ;;  %v682_v22 = vadd.f32 %v681_v49, %v680_v3  ;;  %v861_v31 = vadd.f32 %v860_v43, %v859_v15  ;;  %v1042_v4 = vadd.f32 %v1041_v46, %v1040_v38  ;;  %v2868_v44 = vld [vmem:[%s2334_s16 + $0x48] sm:$0xff]  ;;  %v2871_v49 = vld [vmem:[%s2334_s16 + $0x50] sm:$0xff]  ;;  %v2874_v43 = vld [vmem:[%s2334_s16 + $0x58] sm:$0xff] }
 0x2b8   : > { %v871_v0 = vrot.slane %v870_v28, 1  ;;  %v512_v7 = vmul.f32 0.03125, %v509_v10  ;;  %v511_v45 = vmul.f32 0.03125, %v500_v23  ;;  %v1200_v27 = vstv %s1199_s25  ;;  %v2880_v46 = vld [vmem:[%s2334_s16 + $0x88] sm:$0xff]  ;;  %v2883_v10 = vld [vmem:[%s2334_s16 + $0x90] sm:$0xff] }
 0x2b9   : > { %v1052_v34 = vrot.slane %v1051_v26, 1  ;;  %v862_v16 = vrot.slane %v861_v31, 1  ;;  %v692_v42 = vmul.f32 0.03125, %v682_v22  ;;  %v1043_v60 = vrot.slane %v1042_v4, 1  ;;  %3219 = vst [vmem:[#allocation32_spill] sm:$0xff] %v2880_v46  ;;  %v2889_v22 = vld [vmem:[%s2334_s16 + $0xd0] sm:$0xff] }
 0x2ba   : > { %v872_v35 = vadd.f32 %v871_v0, %v870_v28  ;;  %v1066_v29 = vsel %vm1056_vm2, %v512_v7, %v693_v52  ;;  %v2877_v28 = vld [vmem:[%s2334_s16 + $0x80] sm:$0xff]  ;;  %v1405_v0 = vsub.s32 1, %v2404_v9  ;;  %v2896_v23 = vld [vmem:[%s2334_s16 + $0xb0] sm:$0xff] }
 0x2bb   : > { %v1053_v51 = vadd.f32 %v1052_v34, %v1051_v26  ;;  %v863_v37 = vadd.f32 %v862_v16, %v861_v31  ;;  %v1044_v32 = vadd.f32 %v1043_v60, %v1042_v4  ;;  %v1065_v38 = vsel %vm1056_vm2, %v511_v45, %v692_v42  ;;  %v2886_v26 = vld [vmem:[%s2334_s16 + $0x98] sm:$0xff]  ;;  %v1672_v52 = vld [vmem:[%s2334_s16 + $0x60] sm:$0xff]  ;;  %v2911_v60 = vld [vmem:[%s2334_s16 + $0x68] sm:$0xff] }
 0x2bc   : > { %v874_v41 = vmul.f32 0.03125, %v872_v35  ;;  %3220 = vst [vmem:[#allocation33_spill] sm:$0xff] %v2886_v26  ;;  %v2892_v31 = vld [vmem:[%s2334_s16 + $0xd8] sm:$0xff]  ;;  %v1454_v34 = vsub.s32 2, %v2404_v9  ;;  %v1503_v16 = vsub.s32 3, %v2404_v9  ;;  %v1395_v35 = vmul.f32 %v2865_v30, %v2658_v36  ;;  %v2914_v7 = vld [vmem:[%s2334_s16 + $0xf0] sm:$0xff] }
 0x2bd   : > { %v1055_v48 = vmul.f32 0.03125, %v1053_v51  ;;  %v873_v15 = vmul.f32 0.03125, %v863_v37  ;;  %v1054_v25 = vmul.f32 0.03125, %v1044_v32  ;;  %3221 = vst [vmem:[#allocation34_spill] sm:$0xff] %v2892_v31  ;;  %v2899_v4 = vld [vmem:[%s2334_s16 + $0xb8] sm:$0xff]  ;;  %v2908_v42 = vmul.f32 %v2868_v44, %v2658_v36  ;;  %v2932_v45 = vld [vmem:[%s2334_s16 + $0xc0] sm:$0xff] }
 0x2be   : > { %v1068_v20 = vsel %vm1059_vm3, %v1066_v29, %v874_v41  ;;  %3222 = vst [vmem:[#allocation35_spill] sm:$0xff] %v2899_v4  ;;  %v2917_v51 = vld [vmem:[%s2334_s16 + $0xf8] sm:$0xff]  ;;  %v1397_v37 = vmul.f32 %v2871_v49, %v2660_v39  ;;  %v2923_v9 = vmul.f32 %v2874_v43, %v2660_v39  ;;  %v1444_v41 = vmul.f32 %v2877_v28, %v2662_v40  ;;  %v2935_v32 = vld [vmem:[%s2334_s16 + $0xc8] sm:$0xff] }
 0x2bf   : > { %v1070_v24 = vsel %vm1062_vm4, %v1068_v20, %v1055_v48  ;;  %v1067_v12 = vsel %vm1059_vm3, %v1065_v38, %v873_v15  ;;  %3223 = vst [vmem:[#allocation36_spill] sm:$0xff] %v2917_v51  ;;  %v2929_v36 = vmul.f32 %v2880_v46, %v2662_v40  ;;  %3224 = vst [vmem:[#allocation37_spill] sm:$0xff] %v2935_v32  ;;  %v2938_v48 = vld [vmem:[%s2334_s16 + $0xa0] sm:$0xff]  ;;  %v2953_v20 = vld [vmem:[%s2334_s16 + $0xa8] sm:$0xff] }
 0x2c0   : > { %1336 = vmatprep.mubr.f32.mxu0 %v1070_v24  ;;  %v1069_v21 = vsel %vm1062_vm4, %v1067_v12, %v1054_v25  ;;  %v1446_v29 = vmul.f32 %v2883_v10, %v2664_v14  ;;  %v2944_v39 = vmul.f32 %v2886_v26, %v2664_v14  ;;  %v1495_v15 = vmul.f32 %v2889_v22, %v2706_v11  ;;  %v2956_v25 = vld [vmem:[%s2334_s16 + $0xe0] sm:$0xff]  ;;  %v2959_v38 = vld [vmem:[%s2334_s16 + $0xe8] sm:$0xff]  ;;  %s3016_s16 = scalar_lea.vmem [#allocation8], %s1641_s22  ;;  %s1725_s22 = sshll.u32 %s2204_s6, 12 }
 0x2c1   : > { %1337 = vmatmul.mubr.f32.vlgmr.msra.gmra.mrb[0].mxu0 %v1069_v21  ;;  %v2950_v40 = vmul.f32 %v2892_v31, %v2706_v11  ;;  %3225 = vst [vmem:[#allocation38_spill] sm:$0xff] %v2953_v20  ;;  %3226 = vst [vmem:[#allocation39_spill] sm:$0xff] %v2959_v38  ;;  %v1450_v24 = vmul.f32 %v2896_v23, %v2756_v59  ;;  %v2965_v14 = vmul.f32 %v2899_v4, %v2756_v59  ;;  %v3237_v46 = vld [vmem:[#allocation24_spill] sm:$0xff]  ;;  %s1549_s30 = sshll.u32 %s3016_s16, 4  ;;  %s3091_s15 = scalar_lea.hbm %s3156_s7, %s1725_s22  ;;  %s3093_s30 = int_to_ptr.vmem [resolvable:$true] %s1549_s30 }
 0x2c2   : > { %v1399_v12 = vmul.f32 %v1672_v52, %v2754_v17  ;;  %v2970_v21 = vmul.f32 %v2911_v60, %v2754_v17  ;;  %v1499_v11 = vmul.f32 %v2914_v7, %v2791_v63  ;;  %v2982_v59 = vmul.f32 %v2935_v32, %v2770_v58  ;;  %s2060_s13 = scalar_lea.vmem %s3093_s30, 4096  ;;  %p2067_p10 = scmp.lt.s32.totalorder %s3093_s30, %s2065_s21 }
 0x2c3   : > { %v2988_v17 = vmul.f32 %v2953_v20, %v2800_v18  ;;  %p2061_p4 = scmp.ne.s32.totalorder %s3093_s30, %s2060_s13  ;;  %p2068_p13 = scmp.lt.s32.totalorder %s2066_s23, %s2060_s13 }
 0x2c5   : > { %p2062_p6 = pnand %p2061_p4, %p2277_p12  ;;  %p2069_p3 = por %p2068_p13, %p2067_p10 }
 0x2c7   : > { %p2063_p8 = pneg %p2062_p6 }
 0x2c9   : > { %p2070_p7 = pnand %p2069_p3, %p2063_p8 }
 0x389   : > { %v1267_v56 = vpop.f32.mrb[0].mxu1 }
 0x38a   : > { %v1269_v61 = vpop.f32.mrb[1].mxu1  ;;  %v1268_v1 = vadd.f32 %v1267_v56, %v1200_v27  ;;  %v2976_v56 = vmul.f32 %v2917_v51, %v2791_v63  ;;  %v2994_v63 = vmul.f32 %v2959_v38, %v2822_v55  ;;  %v3232_v51 = vld [vmem:[#allocation25_spill] sm:$0xff] }
 0x38b   : > { %v1270_v54 = vadd.f32 %v1269_v61, %v1200_v27  ;;  %v1493_v61 = vmul.f32 %v2932_v45, %v2770_v58 }
 0x38c   : > { %3227 = vst [vmem:[#allocation40_spill] sm:$0xff] %v2976_v56  ;;  %3228 = vst [vmem:[#allocation41_spill] sm:$0xff] %v2994_v63  ;;  %v3238_v63 = vld [vmem:[#allocation28_spill] sm:$0xff] }
 0x394   : > { %v1338_v53 = vpop.f32.mrb[0].mxu0 }
 0x395   : > { %v1339_v13 = vadd.f32 %v1338_v53, %v1268_v1  ;;  %v1340_v8 = vpop.f32.mrb[1].mxu0  ;;  %v1448_v1 = vmul.f32 %v2938_v48, %v2800_v18 }
 0x396   : > { %v1341_v5 = vadd.f32 %v1340_v8, %v1270_v54  ;;  %v1497_v54 = vmul.f32 %v2956_v25, %v2822_v55  ;;  %v3231_v55 = vld [vmem:[#allocation21_spill] sm:$0xff] }
 0x397   : > { %v1343_v33 = vsub.f32 0.0, %v1339_v13 }
 0x398   : > { %v1344_v47 = vsub.f32 0.0, %v1341_v5 }
 0x399   : > { %v1345_v2 = vmul.f32 1.442695, %v1343_v33 }
 0x39a   : > { %v1347_v3 = vmul.f32 1.442695, %v1344_v47 }
 0x39b   : > { %1962 = vpow2.f32 %v1345_v2 }
 0x39c   : > { %1964 = vpow2.f32 %v1347_v3  ;;  %v3229_v3 = vld [vmem:[#allocation17_spill] sm:$0xff] }
 0x3a5   : > { %v1963_v6 = vpop.eup %1962 }
 0x3a6   : > { %v1965_v62 = vpop.eup %1964  ;;  %v1349_v50 = vadd.f32 1.0, %v1963_v6 }
 0x3a7   : > { %v1350_v57 = vadd.f32 1.0, %v1965_v62  ;;  %v3230_v62 = vld [vmem:[#allocation13_spill] sm:$0xff] }
 0x3a8   : > { %1966 = vrcp.f32 %v1349_v50 }
 0x3a9   : > { %1968 = vrcp.f32 %v1350_v57 }
 0x3b2   : > { %v1967_v27 = vpop.eup %1966 }
 0x3b3   : > { %v1969_v53 = vpop.eup %1968  ;;  %v1358_v13 = vrot.slane %v1967_v27, %v2410_v19  ;;  %v1406_v58 = vrot.slane %v1967_v27, %v1405_v0  ;;  %v1455_v8 = vrot.slane %v1967_v27, %v1454_v34  ;;  %v1504_v5 = vrot.slane %v1967_v27, %v1503_v16  ;;  %v3233_v27 = vld [vmem:[#allocation29_spill] sm:$0xff] }
 0x3b4   : > { %v1362_v33 = vrot.slane %v1969_v53, %v2410_v19  ;;  %v1410_v47 = vrot.slane %v1969_v53, %v1405_v0  ;;  %v2998_v2 = vrot.slane %v1969_v53, %v1454_v34  ;;  %v3000_v18 = vrot.slane %v1969_v53, %v1503_v16  ;;  %v3234_v19 = vld [vmem:[#allocation16_spill] sm:$0xff] }
 0x3b5   : > { %v1363_v6 = vmul.f32 %v1358_v13, %v3229_v3  ;;  %v1365_v50 = vmul.f32 %v1358_v13, %v3230_v62  ;;  %v1367_v57 = vmul.f32 %v1358_v13, %v3231_v55  ;;  %v1369_v38 = vmul.f32 %v1358_v13, %v3232_v51  ;;  %v3235_v34 = vld [vmem:[#allocation12_spill] sm:$0xff]  ;;  %v3245_v13 = vld [vmem:[#allocation14_spill] sm:$0xff] }
 0x3b6   : > { %v1411_v31 = vmul.f32 %v1406_v58, %v1395_v35  ;;  %v1413_v32 = vmul.f32 %v1406_v58, %v1397_v37  ;;  %v1415_v4 = vmul.f32 %v1406_v58, %v1399_v12  ;;  %v1417_v20 = vmul.f32 %v1406_v58, %v3233_v27  ;;  %v3236_v16 = vld [vmem:[#allocation20_spill] sm:$0xff]  ;;  %v3240_v12 = vld [vmem:[#allocation15_spill] sm:$0xff] }
 0x3b7   : > { %v1371_v0 = vadd.f32 %v3234_v19, %v1363_v6  ;;  %v1373_v26 = vadd.f32 %v3235_v34, %v1365_v50  ;;  %v1375_v53 = vadd.f32 %v3236_v16, %v1367_v57  ;;  %v1377_v3 = vadd.f32 %v3237_v46, %v1369_v38  ;;  %v3248_v50 = vld [vmem:[#allocation30_spill] sm:$0xff]  ;;  %v3250_v19 = vld [vmem:[#allocation40_spill] sm:$0xff]  ;;  %v3252_v34 = vld [vmem:[#allocation33_spill] sm:$0xff] }
 0x3b8   : > { %v1419_v56 = vadd.f32 %v2865_v30, %v1411_v31  ;;  %v1421_v62 = vadd.f32 %v2871_v49, %v1413_v32  ;;  %v1423_v55 = vadd.f32 %v1672_v52, %v1415_v4  ;;  %v1425_v51 = vadd.f32 %v3238_v63, %v1417_v20 }
 0x3b9   : > { %1379 = vst [vmem:[%s3016_s16] sm:$0xff] %v1371_v0  ;;  %1381 = vst [vmem:[%s3016_s16 + $0x10] sm:$0xff] %v1373_v26  ;;  %v1460_v30 = vmul.f32 %v1455_v8, %v1444_v41  ;;  %v1462_v49 = vmul.f32 %v1455_v8, %v1446_v29  ;;  %v1464_v46 = vmul.f32 %v1455_v8, %v1448_v1 }
 0x3ba   : > { %1383 = vst [vmem:[%s3016_s16 + $0x20] sm:$0xff] %v1375_v53  ;;  %1385 = vst [vmem:[%s3016_s16 + $0x30] sm:$0xff] %v1377_v3  ;;  %v1466_v31 = vmul.f32 %v1455_v8, %v1450_v24  ;;  %v1509_v4 = vmul.f32 %v1504_v5, %v1493_v61  ;;  %v1511_v52 = vmul.f32 %v1504_v5, %v1495_v15  ;;  %v3246_v8 = vld [vmem:[#allocation22_spill] sm:$0xff]  ;;  %v3254_v3 = vld [vmem:[#allocation35_spill] sm:$0xff] }
 0x3bb   : > { %1676 = vst [vmem:[%s3016_s16 + $0x40] sm:$0xff] %v1419_v56  ;;  %1678 = vst [vmem:[%s3016_s16 + $0x50] sm:$0xff] %v1421_v62  ;;  %v1513_v35 = vmul.f32 %v1504_v5, %v1497_v54  ;;  %v1515_v37 = vmul.f32 %v1504_v5, %v1499_v11  ;;  %v1468_v26 = vadd.f32 %v2877_v28, %v1460_v30  ;;  %v3239_v28 = vld [vmem:[#allocation19_spill] sm:$0xff]  ;;  %v3244_v54 = vld [vmem:[#allocation18_spill] sm:$0xff] }
 0x3bc   : > { %1680 = vst [vmem:[%s3016_s16 + $0x60] sm:$0xff] %v1423_v55  ;;  %1682 = vst [vmem:[%s3016_s16 + $0x70] sm:$0xff] %v1425_v51  ;;  %v1470_v41 = vadd.f32 %v2883_v10, %v1462_v49  ;;  %v1472_v32 = vadd.f32 %v2938_v48, %v1464_v46  ;;  %v1474_v29 = vadd.f32 %v2896_v23, %v1466_v31  ;;  %v3241_v11 = vld [vmem:[#allocation23_spill] sm:$0xff]  ;;  %v3253_v53 = vld [vmem:[#allocation38_spill] sm:$0xff] }
 0x3bd   : > { %v1517_v20 = vadd.f32 %v2932_v45, %v1509_v4  ;;  %v1519_v38 = vadd.f32 %v2889_v22, %v1511_v52  ;;  %v1521_v15 = vadd.f32 %v2956_v25, %v1513_v35  ;;  %v1523_v24 = vadd.f32 %v2914_v7, %v1515_v37  ;;  %1692 = vst [vmem:[%s3016_s16 + $0x80] sm:$0xff] %v1468_v26  ;;  %v3242_v23 = vld [vmem:[#allocation27_spill] sm:$0xff]  ;;  %v3256_v55 = vld [vmem:[#allocation34_spill] sm:$0xff]  ;;  %v3258_v46 = vld [vmem:[#allocation36_spill] sm:$0xff] }
 0x3be   : > { %1694 = vst [vmem:[%s3016_s16 + $0x90] sm:$0xff] %v1470_v41  ;;  %1696 = vst [vmem:[%s3016_s16 + $0xa0] sm:$0xff] %v1472_v32  ;;  %v1364_v10 = vmul.f32 %v1362_v33, %v3239_v28  ;;  %v1366_v48 = vmul.f32 %v1362_v33, %v3240_v12  ;;  %v1368_v56 = vmul.f32 %v1362_v33, %v3241_v11  ;;  %v3243_v25 = vld [vmem:[#allocation31_spill] sm:$0xff] }
 0x3bf   : > { %1698 = vst [vmem:[%s3016_s16 + $0xb0] sm:$0xff] %v1474_v29  ;;  %v1370_v61 = vmul.f32 %v1362_v33, %v3242_v23  ;;  %1708 = vst [vmem:[%s3016_s16 + $0xc0] sm:$0xff] %v1517_v20  ;;  %v1412_v22 = vmul.f32 %v1410_v47, %v2908_v42  ;;  %v1414_v7 = vmul.f32 %v1410_v47, %v2923_v9  ;;  %v3247_v33 = vld [vmem:[#allocation26_spill] sm:$0xff]  ;;  %v3257_v30 = vld [vmem:[#allocation39_spill] sm:$0xff] }
 0x3c0   : > { %1710 = vst [vmem:[%s3016_s16 + $0xd0] sm:$0xff] %v1519_v38  ;;  %1712 = vst [vmem:[%s3016_s16 + $0xe0] sm:$0xff] %v1521_v15  ;;  %v1416_v45 = vmul.f32 %v1410_v47, %v2970_v21  ;;  %v1418_v1 = vmul.f32 %v1410_v47, %v3243_v25  ;;  %v1372_v63 = vadd.f32 %v3244_v54, %v1364_v10 }
 0x3c1   : > { %1714 = vst [vmem:[%s3016_s16 + $0xf0] sm:$0xff] %v1523_v24  ;;  %v1374_v58 = vadd.f32 %v3245_v13, %v1366_v48  ;;  %v1376_v5 = vadd.f32 %v3246_v8, %v1368_v56  ;;  %v1378_v6 = vadd.f32 %v3247_v33, %v1370_v61  ;;  %v1420_v42 = vadd.f32 %v2868_v44, %v1412_v22 }
 0x3c2   : > { %v1422_v9 = vadd.f32 %v2874_v43, %v1414_v7  ;;  %v1424_v21 = vadd.f32 %v2911_v60, %v1416_v45  ;;  %v1426_v47 = vadd.f32 %v3248_v50, %v1418_v1  ;;  %1380 = vst [vmem:[%s3016_s16 + $0x8] sm:$0xff] %v1372_v63  ;;  %v1461_v57 = vmul.f32 %v2998_v2, %v2929_v36 }
 0x3c3   : > { %1382 = vst [vmem:[%s3016_s16 + $0x18] sm:$0xff] %v1374_v58  ;;  %1384 = vst [vmem:[%s3016_s16 + $0x28] sm:$0xff] %v1376_v5  ;;  %v1463_v44 = vmul.f32 %v2998_v2, %v2944_v39  ;;  %v1465_v43 = vmul.f32 %v2998_v2, %v2988_v17  ;;  %v1467_v60 = vmul.f32 %v2998_v2, %v2965_v14  ;;  %v3249_v39 = vld [vmem:[#allocation41_spill] sm:$0xff]  ;;  %v3251_v2 = vld [vmem:[#allocation32_spill] sm:$0xff] }
 0x3c4   : > { %1386 = vst [vmem:[%s3016_s16 + $0x38] sm:$0xff] %v1378_v6  ;;  %1677 = vst [vmem:[%s3016_s16 + $0x48] sm:$0xff] %v1420_v42  ;;  %v1510_v27 = vmul.f32 %v3000_v18, %v2982_v59  ;;  %v1512_v36 = vmul.f32 %v3000_v18, %v2950_v40  ;;  %v1514_v17 = vmul.f32 %v3000_v18, %v3249_v39 }
 0x3c5   : > { %1679 = vst [vmem:[%s3016_s16 + $0x58] sm:$0xff] %v1422_v9  ;;  %1681 = vst [vmem:[%s3016_s16 + $0x68] sm:$0xff] %v1424_v21  ;;  %v1516_v14 = vmul.f32 %v3000_v18, %v3250_v19  ;;  %v1469_v0 = vadd.f32 %v3251_v2, %v1461_v57  ;;  %v1471_v16 = vadd.f32 %v3252_v34, %v1463_v44  ;;  %v3255_v18 = vld [vmem:[#allocation37_spill] sm:$0xff] }
 0x3c6   : > { %1683 = vst [vmem:[%s3016_s16 + $0x78] sm:$0xff] %v1426_v47  ;;  %v1473_v59 = vadd.f32 %v3253_v53, %v1465_v43  ;;  %v1475_v40 = vadd.f32 %v3254_v3, %v1467_v60  ;;  %v1518_v62 = vadd.f32 %v3255_v18, %v1510_v27  ;;  %v1520_v51 = vadd.f32 %v3256_v55, %v1512_v36 }
 0x3c7   : > { %v1522_v49 = vadd.f32 %v3257_v30, %v1514_v17  ;;  %v1524_v31 = vadd.f32 %v3258_v46, %v1516_v14  ;;  %1693 = vst [vmem:[%s3016_s16 + $0x88] sm:$0xff] %v1469_v0  ;;  %1695 = vst [vmem:[%s3016_s16 + $0x98] sm:$0xff] %v1471_v16 }
 0x3c8   : > { %1697 = vst [vmem:[%s3016_s16 + $0xa8] sm:$0xff] %v1473_v59  ;;  %1699 = vst [vmem:[%s3016_s16 + $0xb8] sm:$0xff] %v1475_v40 }
 0x3c9   : > { %1709 = vst [vmem:[%s3016_s16 + $0xc8] sm:$0xff] %v1518_v62  ;;  %1711 = vst [vmem:[%s3016_s16 + $0xd8] sm:$0xff] %v1520_v51 }
 0x3ca   : > { %1713 = vst [vmem:[%s3016_s16 + $0xe8] sm:$0xff] %v1522_v49  ;;  %1715 = vst [vmem:[%s3016_s16 + $0xf8] sm:$0xff] %v1524_v31 }
 0x3cb   : > { %2073 = shalt.err (!%p2070_p7)
}
 0x3cc   : > { %s2074_s12 = scalar_lea.hbm %s3091_s15, 4096  ;;  %s2078_s25 = scalar_lea.hbm %s3156_s7, 8192 }
 0x3cd   : > { %p2075_p9 = scmp.ne.s32.totalorder %s3091_s15, %s2074_s12  ;;  %p2079_p5 = scmp.lt.u32.totalorder %s3091_s15, %s3156_s7 }
 0x3ce   : > { %p2080_p11 = scmp.lt.u32.totalorder %s2078_s25, %s2074_s12  ;;  %p2082_p4 = scmp.lt.u32.totalorder %s2074_s12, %s3091_s15 }
 0x3cf   : > { %p2076_p1 = pnand %p2075_p9, %p2277_p12 }
 0x3d0   : > { %p2081_p2 = por %p2080_p11, %p2079_p5 }
 0x3d1   : > { %p2077_p0 = pneg %p2076_p1 }
 0x3d2   : > { %p2083_p6 = por %p2082_p4, %p2081_p2 }
 0x3d4   : > { %p2084_p8 = pnand %p2083_p6, %p2077_p0 }
 0x3d6   : > { %2087 = shalt.err (!%p2084_p8)
}
 0x3d7   : > { %s2138_s6 = smov 256   ;;  %s2139_s24 = smov 16  }
 0x3d8   : > { %1864 = dma.vmem_to_hbm [thread:$0]  (%p2277_p12), %s3093_s30, 4096, %s3091_s15, %s1535_s11, %s2138_s6, %s2138_s6, %s2139_s24  }
 0x3d9 PF: > { %s1564_s13 = sand.u32 1, %s2118_s26   ;;  %p3259_p10 = scmp.ne.s32.totalorder %s3189_s9, 0 }
 0x3da   : > { %p3260_p13 = scmp.ge.s32.totalorder %s2130_s29, 2  ;;  %s1565_s20 = scalar_lea.sflag [#allocation5], %s1564_s13 }
 0x3dc   : > { %p1875_p3 = pnand %p3260_p13, %p3259_p10 }
 0x3de   : > { %2113 = dma.done.wait (!%p1875_p3), %s1565_s20, 4096  }
 0x3df   : > { %2115 = vsyncadd (!%p1875_p3), %s1565_s20, 4294963200  ;;  %p22_p7 = scmp.ge.s32.totalorder %s2239_s14, 4   ;;  %s3261_s26 = smov %s2122_s27 }
 0x3e0   : > { %s3262_s27 = smov %s2126_s28  ;;  %s3263_s28 = smov %s2273_s18 }
 0x3e1   : > { %s3264_s29 = smov %s2239_s14  ;;  %24 = sbr.rel (!%p22_p7) target bundleno = 8 (0x8), region = 103 }
 0x3e8   :  { %1570 = vsyncpa [#allocation4], 1 }
 0x3e9   :  { %1572 = vsyncpa [#allocation4 + $0x1], 1 }
 0x3ea   :  { %1573 = vsyncpa [#allocation7], 1 }
 0x3eb   :  { %1574 = vsyncpa [#allocation5], 1 }
 0x3ec   :  { %1576 = vsyncpa [#allocation5 + $0x1], 1 }

</bundles_post_ra>
